<compile_context>
chip_gen: v7x
topology: tpu7x:2x2x1
jax: 0.10.0
libtpu: 0.0.40
codegen_flags: <defaults>
</compile_context>

<pallas_src>
import functools

import jax
import jax.numpy as jnp
from jax.experimental import pallas as pl
from jax.experimental.pallas import tpu as pltpu

DIM = 200            # self.dim in the PyTorch module
N_OUTPUTS = 128      # n_outputs
HALF_WIDTH = 2
PATCH = 2 * HALF_WIDTH + 1     # 5 -> AvgPool2d(5, stride=1) over the 5x5 patch
BN_EPS = 1e-5

C_PAD = 256          # channel dim padded 200 -> 256 (lane aligned, full MXU width)
BLOCK_B = 128        # samples per grid step; comfortably fits VMEM on v5e/v6e/v7x
VMEM_LIMIT = 56 * 1024 * 1024  # < v7x's 64 MiB physical VMEM, >> default scoped limits


def _round_up(n, m):
    return ((n + m - 1) // m) * m


def _embed_kernel(x_ref, w1_ref, b1_ref, w2_ref, b2_ref, w3_ref, b3_ref,
                  w4_ref, b4_ref, wfc_ref, bfc_ref, out_ref,
                  *, tb, hw_pad, c_pad):
    """One batch block.

    x_ref:   (tb, hw_pad, c_in_pad) bf16 pixels (zero-padded rows / channels)
    w*_ref:  bf16 BN-folded 1x1-conv weights; b*_ref: f32 folded biases (1, c_pad)
    wfc_ref: f32 (c_pad, N_OUTPUTS) with the 1/25 pooling scale folded in
    bfc_ref: f32 (1, N_OUTPUTS) with the padded-row junk correction folded in
    out_ref: (tb, N_OUTPUTS) f32
    """
    c_in_pad = x_ref.shape[-1]
    # (tb, 32, C) -> (tb*32, C): free view (sublane/lane aligned).
    h = x_ref[...].reshape(tb * hw_pad, c_in_pad)

    def conv_bn_relu(h_bf, w_ref, b_ref):
        # 1x1 conv == per-pixel matmul; eval-mode BN already folded into w/b.
        # bf16 operands -> fast MXU path, f32 accumulation; bias + ReLU in f32.
        y = jnp.dot(h_bf, w_ref[...], preferred_element_type=jnp.float32)
        return jnp.maximum(y + b_ref[...], 0.0)

    h = conv_bn_relu(h, w1_ref, b1_ref)                           # x is already bf16
    h = conv_bn_relu(h.astype(jnp.bfloat16), w2_ref, b2_ref)
    h = conv_bn_relu(h.astype(jnp.bfloat16), w3_ref, b3_ref)
    h = conv_bn_relu(h.astype(jnp.bfloat16), w4_ref, b4_ref)

    # AvgPool2d(5, stride=1) over the 5x5 patch == mean over the 25 real pixel rows.
    # hw is padded 25 -> 32; the 7 padded (zero-input) rows contribute a constant
    # ReLU(bias) junk row whose effect is pre-subtracted from the FC bias in the
    # wrapper, so a plain unmasked sublane sum is correct here.  The 1/25 factor is
    # folded into wfc.
    pooled = jnp.sum(h.reshape(tb, hw_pad, c_pad), axis=1)        # (tb, c_pad) f32

    # Tiny final FC in f32 for accuracy (MXU handles f32 fine at this size).
    out_ref[...] = (jnp.dot(pooled, wfc_ref[...],
                            preferred_element_type=jnp.float32) + bfc_ref[...])


def _fold_bn(w, b, gamma, beta, mean, var):
    """Fold eval-mode BatchNorm into the preceding 1x1 conv.
    w: (in_dim, out_dim), b: (out_dim,) -> folded (w', b')."""
    s = gamma / jnp.sqrt(var + BN_EPS)
    t = beta - s * mean
    return w * s[None, :], b * s + t


def _pad2(a, rows, cols):
    return jnp.zeros((rows, cols), a.dtype).at[:a.shape[0], :a.shape[1]].set(a)


def embedding_net_hyperx_forward(x_nchw, params, *, block_b=BLOCK_B):
    """x_nchw: (B, C_in, H, W) float32 with H = W = PATCH."""
    B, C_in, H, W = x_nchw.shape
    assert H == PATCH and W == PATCH
    hw = H * W
    hw_pad = _round_up(hw, 8)          # 25 -> 32 (sublane aligned)
    c_in_pad = _round_up(C_in, 128)    # lane-aligned first-layer K

    tb = min(block_b, _round_up(B, 8))
    b_pad = _round_up(B, tb)

    # NCHW -> (B, H*W, C_in) pixel rows, zero-padded to aligned shapes, bf16.
    x_pix = jnp.transpose(x_nchw, (0, 2, 3, 1)).reshape(B, hw, C_in)
    x_pad = jnp.zeros((b_pad, hw_pad, c_in_pad), jnp.bfloat16)
    x_pad = x_pad.at[:B, :hw, :C_in].set(x_pix.astype(jnp.bfloat16))

    # Fold BN into each conv, zero-pad channels, pre-cast weights to bf16.
    weights = []
    in_pad = c_in_pad
    for i in range(4):
        w, b = params[f"conv{i}_w"], params[f"conv{i}_b"]
        g, be = params[f"bn{i}_gamma"], params[f"bn{i}_beta"]
        mu, var = params[f"bn{i}_mean"], params[f"bn{i}_var"]
        wf, bf = _fold_bn(w, b, g, be, mu, var)
        weights.append(_pad2(wf, in_pad, C_PAD).astype(jnp.bfloat16))
        weights.append(_pad2(bf.reshape(1, -1), 1, C_PAD))   # f32
        in_pad = C_PAD

    # Fold the 1/25 pooling scale into the FC weight (kept f32); pad K dim to 256.
    wfc = _pad2(params["fc_w"].astype(jnp.float32) / float(hw), C_PAD, N_OUTPUTS)

    # Padded (zero-input) pixel rows still produce a constant ReLU(bias) row after
    # the 4-layer chain.  Precompute it with the same bf16 arithmetic the kernel
    # uses and fold its contribution to the unmasked 32-row sum into the FC bias.
    n_pad_rows = hw_pad - hw
    junk_bf = jnp.zeros((1, c_in_pad), jnp.bfloat16)
    junk_f32 = jnp.zeros((1, C_PAD), jnp.float32)
    for i in range(4):
        junk_f32 = jnp.maximum(
            jnp.dot(junk_bf, weights[2 * i], preferred_element_type=jnp.float32)
            + weights[2 * i + 1], 0.0)
        junk_bf = junk_f32.astype(jnp.bfloat16)
    bfc = (params["fc_b"].reshape(1, N_OUTPUTS).astype(jnp.float32)
           - float(n_pad_rows) * jnp.dot(junk_f32, wfc,
                                         preferred_element_type=jnp.float32))

    grid = (b_pad // tb,)
    const2 = lambda i: (0, 0)      # weights/biases stay resident across grid steps
    in_specs = [
        pl.BlockSpec((tb, hw_pad, c_in_pad), lambda i: (i, 0, 0)),
        pl.BlockSpec((c_in_pad, C_PAD), const2), pl.BlockSpec((1, C_PAD), const2),
        pl.BlockSpec((C_PAD, C_PAD), const2),    pl.BlockSpec((1, C_PAD), const2),
        pl.BlockSpec((C_PAD, C_PAD), const2),    pl.BlockSpec((1, C_PAD), const2),
        pl.BlockSpec((C_PAD, C_PAD), const2),    pl.BlockSpec((1, C_PAD), const2),
        pl.BlockSpec((C_PAD, N_OUTPUTS), const2),
        pl.BlockSpec((1, N_OUTPUTS), const2),
    ]
    out_specs = pl.BlockSpec((tb, N_OUTPUTS), lambda i: (i, 0))

    flops = int(b_pad) * (hw_pad * 2 * (c_in_pad * C_PAD + 3 * C_PAD * C_PAD)
                          + 2 * C_PAD * N_OUTPUTS)
    bytes_accessed = (int(x_pad.size) * 2 + int(b_pad) * N_OUTPUTS * 4
                      + sum(int(w.size) * w.dtype.itemsize for w in weights)
                      + int(wfc.size) * 4 + int(bfc.size) * 4)
    cost = pl.CostEstimate(flops=flops, transcendentals=0,
                           bytes_accessed=bytes_accessed)

    kernel = functools.partial(_embed_kernel, tb=tb, hw_pad=hw_pad, c_pad=C_PAD)
    out = pl.pallas_call(
        kernel,
        out_shape=jax.ShapeDtypeStruct((b_pad, N_OUTPUTS), jnp.float32),
        grid=grid,
        in_specs=in_specs,
        out_specs=out_specs,
        compiler_params=pltpu.CompilerParams(
            dimension_semantics=("parallel",),
            vmem_limit_bytes=VMEM_LIMIT),
        cost_estimate=cost,
    )(x_pad, *weights, wfc, bfc)
    return out[:B]


def _reference_forward(x_nchw, params):
    """Pure-JAX f32 reference mirroring the PyTorch forward (eval-mode BN)."""
    B, C_in, H, W = x_nchw.shape
    h = jnp.transpose(x_nchw, (0, 2, 3, 1)).reshape(B * H * W, C_in)
    for i in range(4):
        w, b = params[f"conv{i}_w"], params[f"conv{i}_b"]
        g, be = params[f"bn{i}_gamma"], params[f"bn{i}_beta"]
        mu, var = params[f"bn{i}_mean"], params[f"bn{i}_var"]
        y = h @ w + b
        y = g * (y - mu) / jnp.sqrt(var + BN_EPS) + be
        h = jnp.maximum(y, 0.0)
    pooled = jnp.mean(h.reshape(B, H * W, DIM), axis=1)
    return pooled @ params["fc_w"] + params["fc_b"]


def make_params(key, input_channels):
    """Deterministic synthetic parameters with the module's shapes."""
    keys = jax.random.split(key, 32)
    k = iter(keys)
    params = {}
    in_dim = input_channels
    for i in range(4):
        # PyTorch Conv2d weight is (out, in, 1, 1); we store (in, out).
        params[f"conv{i}_w"] = 0.1 * jax.random.normal(
            next(k), (in_dim, DIM), jnp.float32)
        params[f"conv{i}_b"] = 0.1 * jax.random.normal(
            next(k), (DIM,), jnp.float32)
        params[f"bn{i}_gamma"] = 1.0 + 0.1 * jax.random.normal(
            next(k), (DIM,), jnp.float32)
        params[f"bn{i}_beta"] = 0.1 * jax.random.normal(
            next(k), (DIM,), jnp.float32)
        params[f"bn{i}_mean"] = 0.1 * jax.random.normal(
            next(k), (DIM,), jnp.float32)
        params[f"bn{i}_var"] = 1.0 + 0.5 * jnp.abs(
            jax.random.normal(next(k), (DIM,), jnp.float32))
        in_dim = DIM
    params["fc_w"] = 0.1 * jax.random.normal(
        next(k), (DIM, N_OUTPUTS), jnp.float32)
    params["fc_b"] = 0.1 * jax.random.normal(
        next(k), (N_OUTPUTS,), jnp.float32)
    return params


if __name__ == "__main__":
    key = jax.random.PRNGKey(0)
    kx, kp = jax.random.split(key)

    B, C_IN = 2, 4
    x = jax.random.normal(kx, (B, C_IN, PATCH, PATCH), jnp.float32)
    params = make_params(kp, C_IN)

    out = jax.block_until_ready(embedding_net_hyperx_forward(x, params))
    ref = _reference_forward(x, params)

    assert out.shape == (B, N_OUTPUTS)
    # bf16 MXU operands / bf16 input (f32 accumulation) -> loosened tolerance.
    err = float(jnp.max(jnp.abs(out - ref)))
    assert err < 5e-2, err

    print("KERNEL_OK")
</pallas_src>

<mosaic_0001>
module attributes {stable_mosaic.version = 11 : i64} {
  func.func @_embed_kernel(%arg0: i32, %arg1: memref<8x32x128xbf16, #tpu.memory_space<vmem>>, %arg2: memref<128x256xbf16, #tpu.memory_space<vmem>>, %arg3: memref<1x256xf32, #tpu.memory_space<vmem>>, %arg4: memref<256x256xbf16, #tpu.memory_space<vmem>>, %arg5: memref<1x256xf32, #tpu.memory_space<vmem>>, %arg6: memref<256x256xbf16, #tpu.memory_space<vmem>>, %arg7: memref<1x256xf32, #tpu.memory_space<vmem>>, %arg8: memref<256x256xbf16, #tpu.memory_space<vmem>>, %arg9: memref<1x256xf32, #tpu.memory_space<vmem>>, %arg10: memref<256x128xf32, #tpu.memory_space<vmem>>, %arg11: memref<1x128xf32, #tpu.memory_space<vmem>>, %arg12: memref<8x128xf32, #tpu.memory_space<vmem>>) attributes {dimension_semantics = [#tpu.dimension_semantics<parallel>], iteration_bounds = array<i64: 1>, scalar_prefetch = 0 : i64, scratch_operands = 0 : i64, tpu.core_type = #tpu.core_type<tc>, window_params = [{transform_indices = @transform_0, window_bounds = array<i64: 8, 32, 128>}, {pipeline_mode = #tpu.pipeline_mode<synchronous>, transform_indices = @transform_1, window_bounds = array<i64: 128, 256>}, {pipeline_mode = #tpu.pipeline_mode<synchronous>, transform_indices = @transform_2, window_bounds = array<i64: 1, 256>}, {pipeline_mode = #tpu.pipeline_mode<synchronous>, transform_indices = @transform_3, window_bounds = array<i64: 256, 256>}, {pipeline_mode = #tpu.pipeline_mode<synchronous>, transform_indices = @transform_4, window_bounds = array<i64: 1, 256>}, {pipeline_mode = #tpu.pipeline_mode<synchronous>, transform_indices = @transform_5, window_bounds = array<i64: 256, 256>}, {pipeline_mode = #tpu.pipeline_mode<synchronous>, transform_indices = @transform_6, window_bounds = array<i64: 1, 256>}, {pipeline_mode = #tpu.pipeline_mode<synchronous>, transform_indices = @transform_7, window_bounds = array<i64: 256, 256>}, {pipeline_mode = #tpu.pipeline_mode<synchronous>, transform_indices = @transform_8, window_bounds = array<i64: 1, 256>}, {pipeline_mode = #tpu.pipeline_mode<synchronous>, transform_indices = @transform_9, window_bounds = array<i64: 256, 128>}, {pipeline_mode = #tpu.pipeline_mode<synchronous>, transform_indices = @transform_10, window_bounds = array<i64: 1, 128>}, {transform_indices = @transform_11, window_bounds = array<i64: 8, 128>}]} {
    %c0 = arith.constant 0 : index
    %c0_0 = arith.constant 0 : index
    %c0_1 = arith.constant 0 : index
    %0 = vector.load %arg1[%c0, %c0_0, %c0_1] : memref<8x32x128xbf16, #tpu.memory_space<vmem>>, vector<8x32x128xbf16>
    %1 = vector.shape_cast %0 : vector<8x32x128xbf16> to vector<256x128xbf16>
    %c0_2 = arith.constant 0 : index
    %c0_3 = arith.constant 0 : index
    %2 = vector.load %arg2[%c0_2, %c0_3] : memref<128x256xbf16, #tpu.memory_space<vmem>>, vector<128x256xbf16>
    %cst = arith.constant dense<0.000000e+00> : vector<256x256xf32>
    %3 = tpu.matmul %1, %2, %cst {dimension_numbers = #tpu.dot_dimension_numbers<[1], [0], [0], [1], [0, 0, 1, 1], [], []>} : vector<256x128xbf16>, vector<128x256xbf16>, vector<256x256xf32> -> vector<256x256xf32>
    %c0_4 = arith.constant 0 : index
    %c0_5 = arith.constant 0 : index
    %4 = vector.load %arg3[%c0_4, %c0_5] : memref<1x256xf32, #tpu.memory_space<vmem>>, vector<1x256xf32>
    %5 = vector.broadcast %4 : vector<1x256xf32> to vector<256x256xf32>
    %6 = arith.addf %3, %5 : vector<256x256xf32>
    %cst_6 = arith.constant 0.000000e+00 : f32
    %7 = vector.broadcast %cst_6 : f32 to vector<256x256xf32>
    %8 = arith.maximumf %6, %7 : vector<256x256xf32>
    %9 = arith.truncf %8 : vector<256x256xf32> to vector<256x256xbf16>
    %c0_7 = arith.constant 0 : index
    %c0_8 = arith.constant 0 : index
    %10 = vector.load %arg4[%c0_7, %c0_8] : memref<256x256xbf16, #tpu.memory_space<vmem>>, vector<256x256xbf16>
    %cst_9 = arith.constant dense<0.000000e+00> : vector<256x256xf32>
    %11 = tpu.matmul %9, %10, %cst_9 {dimension_numbers = #tpu.dot_dimension_numbers<[1], [0], [0], [1], [0, 0, 1, 1], [], []>} : vector<256x256xbf16>, vector<256x256xbf16>, vector<256x256xf32> -> vector<256x256xf32>
    %c0_10 = arith.constant 0 : index
    %c0_11 = arith.constant 0 : index
    %12 = vector.load %arg5[%c0_10, %c0_11] : memref<1x256xf32, #tpu.memory_space<vmem>>, vector<1x256xf32>
    %13 = vector.broadcast %12 : vector<1x256xf32> to vector<256x256xf32>
    %14 = arith.addf %11, %13 : vector<256x256xf32>
    %cst_12 = arith.constant 0.000000e+00 : f32
    %15 = vector.broadcast %cst_12 : f32 to vector<256x256xf32>
    %16 = arith.maximumf %14, %15 : vector<256x256xf32>
    %17 = arith.truncf %16 : vector<256x256xf32> to vector<256x256xbf16>
    %c0_13 = arith.constant 0 : index
    %c0_14 = arith.constant 0 : index
    %18 = vector.load %arg6[%c0_13, %c0_14] : memref<256x256xbf16, #tpu.memory_space<vmem>>, vector<256x256xbf16>
    %cst_15 = arith.constant dense<0.000000e+00> : vector<256x256xf32>
    %19 = tpu.matmul %17, %18, %cst_15 {dimension_numbers = #tpu.dot_dimension_numbers<[1], [0], [0], [1], [0, 0, 1, 1], [], []>} : vector<256x256xbf16>, vector<256x256xbf16>, vector<256x256xf32> -> vector<256x256xf32>
    %c0_16 = arith.constant 0 : index
    %c0_17 = arith.constant 0 : index
    %20 = vector.load %arg7[%c0_16, %c0_17] : memref<1x256xf32, #tpu.memory_space<vmem>>, vector<1x256xf32>
    %21 = vector.broadcast %20 : vector<1x256xf32> to vector<256x256xf32>
    %22 = arith.addf %19, %21 : vector<256x256xf32>
    %cst_18 = arith.constant 0.000000e+00 : f32
    %23 = vector.broadcast %cst_18 : f32 to vector<256x256xf32>
    %24 = arith.maximumf %22, %23 : vector<256x256xf32>
    %25 = arith.truncf %24 : vector<256x256xf32> to vector<256x256xbf16>
    %c0_19 = arith.constant 0 : index
    %c0_20 = arith.constant 0 : index
    %26 = vector.load %arg8[%c0_19, %c0_20] : memref<256x256xbf16, #tpu.memory_space<vmem>>, vector<256x256xbf16>
    %cst_21 = arith.constant dense<0.000000e+00> : vector<256x256xf32>
    %27 = tpu.matmul %25, %26, %cst_21 {dimension_numbers = #tpu.dot_dimension_numbers<[1], [0], [0], [1], [0, 0, 1, 1], [], []>} : vector<256x256xbf16>, vector<256x256xbf16>, vector<256x256xf32> -> vector<256x256xf32>
    %c0_22 = arith.constant 0 : index
    %c0_23 = arith.constant 0 : index
    %28 = vector.load %arg9[%c0_22, %c0_23] : memref<1x256xf32, #tpu.memory_space<vmem>>, vector<1x256xf32>
    %29 = vector.broadcast %28 : vector<1x256xf32> to vector<256x256xf32>
    %30 = arith.addf %27, %29 : vector<256x256xf32>
    %cst_24 = arith.constant 0.000000e+00 : f32
    %31 = vector.broadcast %cst_24 : f32 to vector<256x256xf32>
    %32 = arith.maximumf %30, %31 : vector<256x256xf32>
    %33 = vector.shape_cast %32 : vector<256x256xf32> to vector<8x32x256xf32>
    %cst_25 = arith.constant dense<0.000000e+00> : vector<8x256xf32>
    %34 = vector.multi_reduction <add>, %33, %cst_25 [1] : vector<8x32x256xf32> to vector<8x256xf32>
    %c0_26 = arith.constant 0 : index
    %c0_27 = arith.constant 0 : index
    %35 = vector.load %arg10[%c0_26, %c0_27] : memref<256x128xf32, #tpu.memory_space<vmem>>, vector<256x128xf32>
    %cst_28 = arith.constant dense<0.000000e+00> : vector<8x128xf32>
    %36 = tpu.matmul %34, %35, %cst_28 {dimension_numbers = #tpu.dot_dimension_numbers<[1], [0], [0], [1], [0, 0, 1, 1], [], []>} : vector<8x256xf32>, vector<256x128xf32>, vector<8x128xf32> -> vector<8x128xf32>
    %c0_29 = arith.constant 0 : index
    %c0_30 = arith.constant 0 : index
    %37 = vector.load %arg11[%c0_29, %c0_30] : memref<1x128xf32, #tpu.memory_space<vmem>>, vector<1x128xf32>
    %38 = vector.broadcast %37 : vector<1x128xf32> to vector<8x128xf32>
    %39 = arith.addf %36, %38 : vector<8x128xf32>
    %c0_31 = arith.constant 0 : index
    %c0_32 = arith.constant 0 : index
    %40 = vector.load %arg12[%c0_31, %c0_32] : memref<8x128xf32, #tpu.memory_space<vmem>>, vector<8x128xf32>
    tpu.vector_store %arg12[%c0_31, %c0_32], %39 {strides = array<i32>} : memref<8x128xf32, #tpu.memory_space<vmem>>, vector<8x128xf32>,
    return
  }
  func.func @transform_0(%arg0: i32) -> (i32, i32, i32) {
    %c0_i32 = arith.constant 0 : i32
    %c0_i32_0 = arith.constant 0 : i32
    %c0_i32_1 = arith.constant 0 : i32
    return %arg0, %c0_i32, %c0_i32_0 : i32, i32, i32
  }
  func.func @transform_1(%arg0: i32) -> (i32, i32) {
    %c0_i32 = arith.constant 0 : i32
    %c0_i32_0 = arith.constant 0 : i32
    %c0_i32_1 = arith.constant 0 : i32
    return %c0_i32, %c0_i32_0 : i32, i32
  }
  func.func @transform_2(%arg0: i32) -> (i32, i32) {
    %c0_i32 = arith.constant 0 : i32
    %c0_i32_0 = arith.constant 0 : i32
    %c0_i32_1 = arith.constant 0 : i32
    return %c0_i32, %c0_i32_0 : i32, i32
  }
  func.func @transform_3(%arg0: i32) -> (i32, i32) {
    %c0_i32 = arith.constant 0 : i32
    %c0_i32_0 = arith.constant 0 : i32
    %c0_i32_1 = arith.constant 0 : i32
    return %c0_i32, %c0_i32_0 : i32, i32
  }
  func.func @transform_4(%arg0: i32) -> (i32, i32) {
    %c0_i32 = arith.constant 0 : i32
    %c0_i32_0 = arith.constant 0 : i32
    %c0_i32_1 = arith.constant 0 : i32
    return %c0_i32, %c0_i32_0 : i32, i32
  }
  func.func @transform_5(%arg0: i32) -> (i32, i32) {
    %c0_i32 = arith.constant 0 : i32
    %c0_i32_0 = arith.constant 0 : i32
    %c0_i32_1 = arith.constant 0 : i32
    return %c0_i32, %c0_i32_0 : i32, i32
  }
  func.func @transform_6(%arg0: i32) -> (i32, i32) {
    %c0_i32 = arith.constant 0 : i32
    %c0_i32_0 = arith.constant 0 : i32
    %c0_i32_1 = arith.constant 0 : i32
    return %c0_i32, %c0_i32_0 : i32, i32
  }
  func.func @transform_7(%arg0: i32) -> (i32, i32) {
    %c0_i32 = arith.constant 0 : i32
    %c0_i32_0 = arith.constant 0 : i32
    %c0_i32_1 = arith.constant 0 : i32
    return %c0_i32, %c0_i32_0 : i32, i32
  }
  func.func @transform_8(%arg0: i32) -> (i32, i32) {
    %c0_i32 = arith.constant 0 : i32
    %c0_i32_0 = arith.constant 0 : i32
    %c0_i32_1 = arith.constant 0 : i32
    return %c0_i32, %c0_i32_0 : i32, i32
  }
  func.func @transform_9(%arg0: i32) -> (i32, i32) {
    %c0_i32 = arith.constant 0 : i32
    %c0_i32_0 = arith.constant 0 : i32
    %c0_i32_1 = arith.constant 0 : i32
    return %c0_i32, %c0_i32_0 : i32, i32
  }
  func.func @transform_10(%arg0: i32) -> (i32, i32) {
    %c0_i32 = arith.constant 0 : i32
    %c0_i32_0 = arith.constant 0 : i32
    %c0_i32_1 = arith.constant 0 : i32
    return %c0_i32, %c0_i32_0 : i32, i32
  }
  func.func @transform_11(%arg0: i32) -> (i32, i32) {
    %c0_i32 = arith.constant 0 : i32
    %c0_i32_0 = arith.constant 0 : i32
    return %arg0, %c0_i32 : i32, i32
  }
}

</mosaic_0001>

<bundles_post_ra>
// kernel: tpu_custom_call.1
= control target key start
LH: loop header
LB: loop body
LE: loop exit
PB: predicated region body
PF: predicated region fallthrough
CT: control target
= control target key end

     0   :  { %16 = vsyncpa [#allocation3], 0  ;;  %s3451_s0 = inlined_call_operand.hbm [shape: bf16[8,32,128], index: 0, kind: input, shape index: {}]   ;;  %s3452_s1 = inlined_call_operand.hbm [shape: bf16[128,256], index: 1, kind: input, shape index: {}]   ;;  %s3453_s2 = inlined_call_operand.vmem [shape: f32[1,256], index: 2, kind: input, shape index: {}]   ;;  %s3454_s3 = inlined_call_operand.hbm [shape: bf16[256,256], index: 3, kind: input, shape index: {}]   ;;  %s3455_s4 = inlined_call_operand.vmem [shape: f32[1,256], index: 4, kind: input, shape index: {}]   ;;  %s3456_s5 = inlined_call_operand.hbm [shape: bf16[256,256], index: 5, kind: input, shape index: {}]   ;;  %s3457_s6 = inlined_call_operand.vmem [shape: f32[1,256], index: 6, kind: input, shape index: {}]   ;;  %s3458_s7 = inlined_call_operand.hbm [shape: bf16[256,256], index: 7, kind: input, shape index: {}]   ;;  %s3459_s8 = inlined_call_operand.vmem [shape: f32[1,256], index: 8, kind: input, shape index: {}]   ;;  %s3460_s9 = inlined_call_operand.hbm [shape: f32[256,128], index: 9, kind: input, shape index: {}]   ;;  %s3461_s10 = inlined_call_operand.vmem [shape: f32[1,128], index: 10, kind: input, shape index: {}]   ;;  %s3462_s11 = inlined_call_operand.hbm [shape: f32[8,128], index: 11, kind: output, shape index: {}]  }
   0x1   :  { %17 = vsyncpa [#allocation6], 0 }
   0x2   :  { %18 = vsyncpa [#allocation9], 0 }
   0x3   :  { %19 = vsyncpa [#allocation12], 0 }
   0x4   :  { %20 = vsyncpa [#allocation4], 0  ;;  %s2961_s17 = smov [#allocation5]   ;;  %s2797_s21 = scalar_lea.hbm %s3452_s1, 2048 }
   0x5   :  { %s38_s18 = sshll.u32 %s2961_s17, 4  ;;  %p2798_p0 = scmp.ne.s32.totalorder %s3452_s1, %s2797_s21  ;;  %s39_s18 = int_to_ptr.vmem [resolvable:$true] %s38_s18 }
   0x6   :  { %p2801_p1 = scmp.lt.u32.totalorder %s2797_s21, %s3452_s1 }
   0x8   :  { %p2803_p2 = pnand %p2801_p1, %p2798_p0 }
   0xa   :  { %2806 = shalt.err (!%p2803_p2)
}
   0xb   :  { %s2807_s26 = scalar_lea.vmem %s39_s18, 2048  ;;  %p2812_p4 = scmp.lt.s32.totalorder %s39_s18, %s39_s18 }
   0xc   :  { %p2808_p3 = scmp.ne.s32.totalorder %s39_s18, %s2807_s26  ;;  %p2813_p5 = scmp.lt.s32.totalorder %s2807_s26, %s2807_s26 }
   0xe   :  { %p2814_p6 = por %p2813_p5, %p2812_p4 }
  0x10   :  { %p2815_p7 = pnand %p2814_p6, %p2808_p3 }
  0x12   :  { %2818 = shalt.err (!%p2815_p7)
}
  0x13   :  { %s2962_s27 = smov 128   ;;  %s2963_s28 = smov 8  }
  0x14   :  { %44 = dma.hbm_to_vmem [thread:$0]  %s3452_s1, 2048, %s39_s18, [#allocation6], %s2962_s27, %s2962_s27, %s2963_s28  }
  0x15   :  { %s2964_s12 = smov [#allocation8]   ;;  %s2965_s14 = smov [#allocation2]  }
  0x16   :  { %s66_s13 = sshll.u32 %s2964_s12, 4  ;;  %s26_s15 = sshll.u32 %s2965_s14, 4  ;;  %s67_s13 = int_to_ptr.vmem [resolvable:$true] %s66_s13  ;;  %s27_s15 = int_to_ptr.vmem [resolvable:$true] %s26_s15 }
  0x17   :  { %s2819_s19 = scalar_lea.hbm %s3456_s5, 4096 }
  0x18   :  { %p2820_p8 = scmp.ne.s32.totalorder %s3456_s5, %s2819_s19  ;;  %p2823_p9 = scmp.lt.u32.totalorder %s2819_s19, %s3456_s5 }
  0x1a   :  { %p2825_p10 = pnand %p2823_p9, %p2820_p8 }
  0x1c   :  { %2828 = shalt.err (!%p2825_p10)
}
  0x1d   :  { %s2829_s1 = scalar_lea.vmem %s67_s13, 4096  ;;  %p2834_p12 = scmp.lt.s32.totalorder %s67_s13, %s67_s13 }
  0x1e   :  { %p2830_p11 = scmp.ne.s32.totalorder %s67_s13, %s2829_s1  ;;  %p2835_p13 = scmp.lt.s32.totalorder %s2829_s1, %s2829_s1 }
  0x20   :  { %p2836_p0 = por %p2835_p13, %p2834_p12 }
  0x22   :  { %p2837_p1 = pnand %p2836_p0, %p2830_p11 }
  0x24   :  { %2840 = shalt.err (!%p2837_p1)
}
  0x25   :  { %72 = dma.hbm_to_vmem [thread:$0]  %s3456_s5, 4096, %s67_s13, [#allocation9], %s2962_s27, %s2962_s27, %s2963_s28  }
  0x26   :  { %s2841_s29 = scalar_lea.hbm %s3451_s0, 2048 }
  0x27   :  { %p2842_p2 = scmp.ne.s32.totalorder %s3451_s0, %s2841_s29  ;;  %p2845_p3 = scmp.lt.u32.totalorder %s2841_s29, %s3451_s0 }
  0x29   :  { %p2847_p4 = pnand %p2845_p3, %p2842_p2 }
  0x2b   :  { %2850 = shalt.err (!%p2847_p4)
}
  0x2c   :  { %s2851_s17 = scalar_lea.vmem %s27_s15, 2048  ;;  %p2856_p6 = scmp.lt.s32.totalorder %s27_s15, %s27_s15 }
  0x2d   :  { %p2852_p5 = scmp.ne.s32.totalorder %s27_s15, %s2851_s17  ;;  %p2857_p7 = scmp.lt.s32.totalorder %s2851_s17, %s2851_s17 }
  0x2f   :  { %p2858_p8 = por %p2857_p7, %p2856_p6 }
  0x31   :  { %p2859_p9 = pnand %p2858_p8, %p2852_p5 }
  0x33   :  { %2862 = shalt.err (!%p2859_p9)
}
  0x34   :  { %s2966_s5 = smov 64   ;;  %s2967_s13 = smov 4  }
  0x35   :  { %32 = dma.hbm_to_vmem [thread:$0]  %s3451_s0, 2048, %s27_s15, [#allocation3], %s2966_s5, %s2966_s5, %s2967_s13  }
  0x36   :  { %s2968_s21 = smov [#allocation7]   ;;  %s2969_s23 = smov [#allocation10]  }
  0x37   :  { %s52_s22 = sshll.u32 %s2968_s21, 4  ;;  %s80_s1 = sshll.u32 %s2969_s23, 4  ;;  %s53_s22 = int_to_ptr.vmem [resolvable:$true] %s52_s22  ;;  %s81_s1 = int_to_ptr.vmem [resolvable:$true] %s80_s1 }
  0x38   :  { %s2863_s25 = scalar_lea.hbm %s3454_s3, 4096 }
  0x39   :  { %p2864_p10 = scmp.ne.s32.totalorder %s3454_s3, %s2863_s25  ;;  %p2867_p11 = scmp.lt.u32.totalorder %s2863_s25, %s3454_s3 }
  0x3b   :  { %p2869_p12 = pnand %p2867_p11, %p2864_p10 }
  0x3d   :  { %2872 = shalt.err (!%p2869_p12)
}
  0x3e   :  { %s2873_s0 = scalar_lea.vmem %s53_s22, 4096  ;;  %p2878_p0 = scmp.lt.s32.totalorder %s53_s22, %s53_s22 }
  0x3f   :  { %p2874_p13 = scmp.ne.s32.totalorder %s53_s22, %s2873_s0  ;;  %p2879_p1 = scmp.lt.s32.totalorder %s2873_s0, %s2873_s0 }
  0x41   :  { %p2880_p2 = por %p2879_p1, %p2878_p0 }
  0x43   :  { %p2881_p3 = pnand %p2880_p2, %p2874_p13 }
  0x45   :  { %2884 = shalt.err (!%p2881_p3)
}
  0x46   :  { %58 = dma.hbm_to_vmem [thread:$0]  %s3454_s3, 4096, %s53_s22, [#allocation6], %s2962_s27, %s2962_s27, %s2963_s28  }
  0x47   :  { %s2885_s5 = scalar_lea.hbm %s3458_s7, 4096 }
  0x48   :  { %p2886_p4 = scmp.ne.s32.totalorder %s3458_s7, %s2885_s5  ;;  %p2889_p5 = scmp.lt.u32.totalorder %s2885_s5, %s3458_s7 }
  0x4a   :  { %p2891_p6 = pnand %p2889_p5, %p2886_p4 }
  0x4c   :  { %2894 = shalt.err (!%p2891_p6)
}
  0x4d   :  { %s2895_s23 = scalar_lea.vmem %s81_s1, 4096  ;;  %p2900_p8 = scmp.lt.s32.totalorder %s81_s1, %s81_s1 }
  0x4e   :  { %p2896_p7 = scmp.ne.s32.totalorder %s81_s1, %s2895_s23  ;;  %p2901_p9 = scmp.lt.s32.totalorder %s2895_s23, %s2895_s23 }
  0x50   :  { %p2902_p10 = por %p2901_p9, %p2900_p8 }
  0x52   :  { %p2903_p11 = pnand %p2902_p10, %p2896_p7 }
  0x54   :  { %2906 = shalt.err (!%p2903_p11)
}
  0x55   :  { %86 = dma.hbm_to_vmem [thread:$0]  %s3458_s7, 4096, %s81_s1, [#allocation9], %s2962_s27, %s2962_s27, %s2963_s28  }
  0x56   :  { %s2970_s18 = smov [#allocation11]   ;;  %s2907_s29 = scalar_lea.hbm %s3460_s9, 4096 }
  0x57   :  { %s94_s24 = sshll.u32 %s2970_s18, 4  ;;  %p2908_p12 = scmp.ne.s32.totalorder %s3460_s9, %s2907_s29  ;;  %s95_s24 = int_to_ptr.vmem [resolvable:$true] %s94_s24 }
  0x58   :  { %p2911_p13 = scmp.lt.u32.totalorder %s2907_s29, %s3460_s9 }
  0x5a   :  { %p2913_p0 = pnand %p2911_p13, %p2908_p12 }
  0x5c   :  { %2916 = shalt.err (!%p2913_p0)
}
  0x5d   :  { %s2917_s14 = scalar_lea.vmem %s95_s24, 4096  ;;  %p2922_p2 = scmp.lt.s32.totalorder %s95_s24, %s95_s24 }
  0x5e   :  { %p2918_p1 = scmp.ne.s32.totalorder %s95_s24, %s2917_s14  ;;  %p2923_p3 = scmp.lt.s32.totalorder %s2917_s14, %s2917_s14 }
  0x60   :  { %p2924_p4 = por %p2923_p3, %p2922_p2 }
  0x62   :  { %p2925_p5 = pnand %p2924_p4, %p2918_p1 }
  0x64   :  { %2928 = shalt.err (!%p2925_p5)
}
  0x65   :  { %100 = dma.hbm_to_vmem [thread:$0]  %s3460_s9, 4096, %s95_s24, [#allocation12], %s2962_s27, %s2962_s27, %s2963_s28  }
  0x66   :  { %2951 = dma.done.wait [#allocation3], 2048  }
  0x67   :  { %2952 = vsyncadd [#allocation3], 4294965248 }
  0x68   :  { %2953 = dma.done.wait [#allocation6], 6144  }
  0x69   :  { %2954 = vsyncadd [#allocation6], 4294961152 }
  0x6a   :  { %2955 = dma.done.wait [#allocation9], 8192  }
  0x6b   :  { %2956 = vsyncadd [#allocation9], 4294959104 }
  0x6c   :  { %2957 = dma.done.wait [#allocation12], 4096  }
  0x6d   :  { %2958 = vsyncadd [#allocation12], 4294963200  ;;  %v2971_v0 = vmov 0   ;;  %v2613_v1 = vld [vmem:[#allocation5 + $0x4] ss:$8 sps:$4 sm:$0xff]   ;;  %v2639_v30 = vld [vmem:[#allocation2 + $0x10] sm:$0xff]  }
  0x6e   :  { %390 = vmatprep.mubr.bf16.mxu0 %v2971_v0  ;;  %v2615_v2 = vld [vmem:[#allocation5] ss:$8 sps:$4 sm:$0xff]   ;;  %358 = vmatprep.subr.bf16.mxu0 %v2613_v1  ;;  %v2616_v3 = vld [vmem:[#allocation5 + $0x14] ss:$8 sps:$4 sm:$0xff]   ;;  %v2618_v4 = vld [vmem:[#allocation5 + $0x10] ss:$8 sps:$4 sm:$0xff]  }
  0x6f   :  { %359 = vmatpush1.bf16.msra.mxu0 %v2615_v2  ;;  %v2619_v5 = vld [vmem:[#allocation5 + $0x24] ss:$8 sps:$4 sm:$0xff]   ;;  %v2621_v6 = vld [vmem:[#allocation5 + $0x20] ss:$8 sps:$4 sm:$0xff]   ;;  %v2622_v7 = vld [vmem:[#allocation5 + $0x34] ss:$8 sps:$4 sm:$0xff]  }
  0x70   :  { %360 = vmatprep.subr.bf16.mxu0 %v2616_v3  ;;  %v2624_v8 = vld [vmem:[#allocation5 + $0x30] ss:$8 sps:$4 sm:$0xff]   ;;  %v2625_v9 = vld [vmem:[#allocation5 + $0x44] ss:$8 sps:$4 sm:$0xff]   ;;  %v2627_v10 = vld [vmem:[#allocation5 + $0x40] ss:$8 sps:$4 sm:$0xff]  }
  0x71   :  { %v2628_v11 = vld [vmem:[#allocation5 + $0x54] ss:$8 sps:$4 sm:$0xff]   ;;  %v2630_v12 = vld [vmem:[#allocation5 + $0x50] ss:$8 sps:$4 sm:$0xff]   ;;  %v2631_v13 = vld [vmem:[#allocation5 + $0x64] ss:$8 sps:$4 sm:$0xff]  }
  0x72   :  { %v2633_v14 = vld [vmem:[#allocation5 + $0x60] ss:$8 sps:$4 sm:$0xff]   ;;  %v2634_v15 = vld [vmem:[#allocation5 + $0x74] ss:$8 sps:$4 sm:$0xff]   ;;  %v2636_v16 = vld [vmem:[#allocation5 + $0x70] ss:$8 sps:$4 sm:$0xff]  }
  0x73   :  { %361 = vmatpush1.bf16.msra.mxu0 %v2618_v4  ;;  %v2653_v17 = vld [vmem:[#allocation7 + $0x4] ss:$8 sps:$4 sm:$0xff]   ;;  %v2655_v18 = vld [vmem:[#allocation7] ss:$8 sps:$4 sm:$0xff]   ;;  %v2656_v19 = vld [vmem:[#allocation7 + $0x14] ss:$8 sps:$4 sm:$0xff]   ;;  %v172_v4 = vlaneseq }
  0x74   :  { %362 = vmatprep.subr.bf16.mxu0 %v2619_v5  ;;  %851 = vmatprep.subr.bf16.mxu1 %v2653_v17  ;;  %v2637_v20 = vld [vmem:[#allocation2] sm:$0xff]   ;;  %v2658_v21 = vld [vmem:[#allocation7 + $0x10] ss:$8 sps:$4 sm:$0xff]   ;;  %v2662_v24 = vld [vmem:[#allocation7 + $0x34] ss:$8 sps:$4 sm:$0xff]   ;;  %vm2293_vm0 = vcmask 1041409  }
  0x75   :  { %852 = vmatpush1.bf16.msra.mxu1 %v2655_v18  ;;  %v2659_v22 = vld [vmem:[#allocation7 + $0x24] ss:$8 sps:$4 sm:$0xff]   ;;  %v2661_v23 = vld [vmem:[#allocation7 + $0x20] ss:$8 sps:$4 sm:$0xff]   ;;  %v2664_v26 = vld [vmem:[#allocation7 + $0x30] ss:$8 sps:$4 sm:$0xff]  }
  0x76   :  { %853 = vmatprep.subr.bf16.mxu1 %v2656_v19  ;;  %v2638_v25 = vld [vmem:[#allocation2 + $0x8] sm:$0xff]   ;;  %v2668_v29 = vld [vmem:[#allocation7 + $0x54] ss:$8 sps:$4 sm:$0xff]   ;;  %v2670_v31 = vld [vmem:[#allocation7 + $0x50] ss:$8 sps:$4 sm:$0xff]   ;;  %vm2295_vm1 = vcmask 1042434  }
  0x77   :  { %363 = vmatpush1.bf16.msra.mxu0 %v2621_v6  ;;  %v2665_v27 = vld [vmem:[#allocation7 + $0x44] ss:$8 sps:$4 sm:$0xff]   ;;  %v2667_v28 = vld [vmem:[#allocation7 + $0x40] ss:$8 sps:$4 sm:$0xff]   ;;  %v2674_v34 = vld [vmem:[#allocation7 + $0x74] ss:$8 sps:$4 sm:$0xff]  }
  0x78   :  { %364 = vmatprep.subr.bf16.mxu0 %v2622_v7  ;;  %v2671_v32 = vld [vmem:[#allocation7 + $0x64] ss:$8 sps:$4 sm:$0xff]   ;;  %v2673_v33 = vld [vmem:[#allocation7 + $0x60] ss:$8 sps:$4 sm:$0xff]   ;;  %v2640_v35 = vld [vmem:[#allocation2 + $0x18] sm:$0xff]   ;;  %v173_v7 = vshrl.u32 %v172_v4, 7 }
  0x79   :  { %854 = vmatpush1.bf16.msra.mxu1 %v2658_v21  ;;  %v2676_v36 = vld [vmem:[#allocation7 + $0x70] ss:$8 sps:$4 sm:$0xff]   ;;  %v2677_v37 = vld [vmem:[#allocation7 + $0x84] ss:$8 sps:$4 sm:$0xff]   ;;  %v2679_v38 = vld [vmem:[#allocation7 + $0x80] ss:$8 sps:$4 sm:$0xff]  }
  0x7a   :  { %855 = vmatprep.subr.bf16.mxu1 %v2659_v22  ;;  %v2680_v39 = vld [vmem:[#allocation7 + $0x94] ss:$8 sps:$4 sm:$0xff]   ;;  %v2641_v40 = vld [vmem:[#allocation2 + $0x20] sm:$0xff]   ;;  %v2682_v41 = vld [vmem:[#allocation7 + $0x90] ss:$8 sps:$4 sm:$0xff]   ;;  %vm2297_vm2 = vcmask 1043459  }
  0x7b   :  { %365 = vmatpush1.bf16.msra.mxu0 %v2624_v8  ;;  %v2683_v42 = vld [vmem:[#allocation7 + $0xa4] ss:$8 sps:$4 sm:$0xff]   ;;  %v2685_v43 = vld [vmem:[#allocation7 + $0xa0] ss:$8 sps:$4 sm:$0xff]   ;;  %v2686_v44 = vld [vmem:[#allocation7 + $0xb4] ss:$8 sps:$4 sm:$0xff]  }
  0x7c   :  { %366 = vmatprep.subr.bf16.mxu0 %v2625_v9  ;;  %v2642_v45 = vld [vmem:[#allocation2 + $0x28] sm:$0xff]   ;;  %v2688_v46 = vld [vmem:[#allocation7 + $0xb0] ss:$8 sps:$4 sm:$0xff]   ;;  %v2692_v49 = vld [vmem:[#allocation7 + $0xd4] ss:$8 sps:$4 sm:$0xff]   ;;  %v3136_v8 = vsub.s32 0, %v173_v7 }
  0x7d   :  { %856 = vmatpush1.bf16.msra.mxu1 %v2661_v23  ;;  %v2689_v47 = vld [vmem:[#allocation7 + $0xc4] ss:$8 sps:$4 sm:$0xff]   ;;  %v2691_v48 = vld [vmem:[#allocation7 + $0xc0] ss:$8 sps:$4 sm:$0xff]   ;;  %v2643_v50 = vld [vmem:[#allocation2 + $0x30] sm:$0xff]   ;;  %vm2299_vm3 = vcmask 1044484  }
  0x7e   :  { %857 = vmatprep.subr.bf16.mxu1 %v2662_v24  ;;  %v2644_v51 = vld [vmem:[#allocation2 + $0x38] sm:$0xff]   ;;  %v2645_v52 = vld [vmem:[#allocation2 + $0x40] sm:$0xff]   ;;  %v2646_v53 = vld [vmem:[#allocation2 + $0x48] sm:$0xff]   ;;  %vm2301_vm4 = vcmask 1045509   ;;  %vm2303_vm5 = vcmask 1046534   ;;  %vm2305_vm6 = vcmask 1047559  }
  0x7f   :  { %367 = vmatpush1.bf16.msra.mxu0 %v2627_v10  ;;  %v2647_v54 = vld [vmem:[#allocation2 + $0x50] sm:$0xff]   ;;  %v2648_v56 = vld [vmem:[#allocation2 + $0x58] sm:$0xff]   ;;  %v2695_v57 = vld [vmem:[#allocation7 + $0xe4] ss:$8 sps:$4 sm:$0xff]   ;;  %v3141_v10 = vsub.s32 1, %v173_v7  ;;  %s2972_s13 = smov [#allocation13]  }
  0x80   :  { %368 = vmatprep.subr.bf16.mxu0 %v2628_v11  ;;  %v2694_v55 = vld [vmem:[#allocation7 + $0xd0] ss:$8 sps:$4 sm:$0xff]   ;;  %v2697_v58 = vld [vmem:[#allocation7 + $0xe0] ss:$8 sps:$4 sm:$0xff]   ;;  %v2698_v59 = vld [vmem:[#allocation7 + $0xf4] ss:$8 sps:$4 sm:$0xff]  }
  0x81   :  { %858 = vmatpush1.bf16.msra.mxu1 %v2664_v26  ;;  %v2700_v60 = vld [vmem:[#allocation7 + $0xf0] ss:$8 sps:$4 sm:$0xff]   ;;  %v2649_v61 = vld [vmem:[#allocation2 + $0x60] sm:$0xff]   ;;  %v2650_v62 = vld [vmem:[#allocation2 + $0x68] sm:$0xff]   ;;  %s2393_s19 = sshll.u32 %s2972_s13, 4  ;;  %s2394_s19 = int_to_ptr.vmem [resolvable:$true] %s2393_s19 }
  0x82   :  { %859 = vmatprep.subr.bf16.mxu1 %v2665_v27  ;;  %v2651_v63 = vld [vmem:[#allocation2 + $0x70] sm:$0xff]   ;;  %v2652_v1 = vld [vmem:[#allocation2 + $0x78] sm:$0xff]   ;;  %v2701_v2 = vld [vmem:[#allocation8] ss:$8 sps:$4 sm:$0xff]   ;;  %s2929_s20 = scalar_lea.vmem %s2394_s19, 128  ;;  %p2934_p7 = scmp.lt.s32.totalorder %s2394_s19, %s2394_s19 }
  0x83   :  { %369 = vmatpush1.bf16.msra.mxu0 %v2630_v12  ;;  %v2703_v3 = vld [vmem:[#allocation8 + $0x4] ss:$8 sps:$4 sm:$0xff]   ;;  %v2704_v5 = vld [vmem:[#allocation8 + $0x10] ss:$8 sps:$4 sm:$0xff]   ;;  %v2706_v6 = vld [vmem:[#allocation8 + $0x14] ss:$8 sps:$4 sm:$0xff]   ;;  %p2930_p6 = scmp.ne.s32.totalorder %s2394_s19, %s2929_s20  ;;  %p2935_p8 = scmp.lt.s32.totalorder %s2929_s20, %s2929_s20 }
  0x84   :  { %370 = vmatprep.subr.bf16.mxu0 %v2631_v13  ;;  %v170_v9 = vld [vmem:[%s3453_s2] sm:$0x3]  ;;  %v2709_v11 = vld [vmem:[#allocation8 + $0x24] ss:$8 sps:$4 sm:$0xff]   ;;  %v2718_v26 = vld [vmem:[#allocation8 + $0x54] ss:$8 sps:$4 sm:$0xff]  }
  0x85   :  { %860 = vmatpush1.bf16.msra.mxu1 %v2667_v28  ;;  %v3144_v12 = vrot.slane %v170_v9, %v3136_v8  ;;  %v3147_v13 = vrot.slane %v170_v9, %v3141_v10  ;;  %v2713_v23 = vld [vmem:[#allocation8 + $0x40] ss:$8 sps:$4 sm:$0xff]   ;;  %v2715_v24 = vld [vmem:[#allocation8 + $0x44] ss:$8 sps:$4 sm:$0xff]   ;;  %p2936_p9 = por %p2935_p8, %p2934_p7 }
  0x86   :  { %861 = vmatprep.subr.bf16.mxu1 %v2668_v29  ;;  %v2733_v9 = vld [vmem:[#allocation8 + $0xa4] ss:$8 sps:$4 sm:$0xff]  }
  0x87   :  { %371 = vmatpush1.bf16.msra.mxu0 %v2633_v14  ;;  %p2937_p10 = pnand %p2936_p9, %p2930_p6 }
  0x88   :  { %372 = vmatprep.subr.bf16.mxu0 %v2634_v15  ;;  %v2710_v15 = vld [vmem:[#allocation8 + $0x30] ss:$8 sps:$4 sm:$0xff]  }
  0x89   :  { %862 = vmatpush1.bf16.msra.mxu1 %v2670_v31 }
  0x8a   :  { %863 = vmatprep.subr.bf16.mxu1 %v2671_v32  ;;  %v2716_v32 = vld [vmem:[#allocation8 + $0x50] ss:$8 sps:$4 sm:$0xff]  }
  0x8b   :  { %373 = vmatpush1.bf16.msra.mxu0 %v2636_v16  ;;  %v2712_v16 = vld [vmem:[#allocation8 + $0x34] ss:$8 sps:$4 sm:$0xff]  }
  0x8c   :  { %1344 = vmatprep.subr.bf16.mxu0 %v2703_v3 }
  0x8d   :  { %864 = vmatpush1.bf16.msra.mxu1 %v2673_v33 }
  0x8e   :  { %391 = vmatmul.mubr.bf16.vlgmr.msra.gmra.mrb[0].mxu0 %v2637_v20  ;;  %865 = vmatprep.subr.bf16.mxu1 %v2674_v34 }
  0x8f   :  { %400 = vmatprep.mubr.bf16.mxu0 %v2971_v0  ;;  %1345 = vmatpush1.bf16.msra.mxu0 %v2701_v2 }
  0x90   :  { %1346 = vmatprep.subr.bf16.mxu0 %v2706_v6 }
  0x91   :  { %866 = vmatpush1.bf16.msra.mxu1 %v2676_v36 }
  0x92   :  { %867 = vmatprep.subr.bf16.mxu1 %v2677_v37 }
  0x93   :  { %1347 = vmatpush1.bf16.msra.mxu0 %v2704_v5  ;;  %v2728_v5 = vld [vmem:[#allocation8 + $0x90] ss:$8 sps:$4 sm:$0xff]  }
  0x94   :  { %1348 = vmatprep.subr.bf16.mxu0 %v2709_v11 }
  0x95   :  { %868 = vmatpush1.bf16.msra.mxu1 %v2679_v38 }
  0x96   :  { %401 = vmatmul.mubr.bf16.gmra.mrb[4].mxu0 %v2638_v25  ;;  %869 = vmatprep.subr.bf16.mxu1 %v2680_v39 }
  0x97   :  { %410 = vmatprep.mubr.bf16.mxu0 %v2971_v0 }
  0x99   :  { %870 = vmatpush1.bf16.msra.mxu1 %v2682_v41 }
  0x9a   :  { %871 = vmatprep.subr.bf16.mxu1 %v2683_v42  ;;  %v2719_v42 = vld [vmem:[#allocation8 + $0x60] ss:$8 sps:$4 sm:$0xff]  }
  0x9d   :  { %872 = vmatpush1.bf16.msra.mxu1 %v2685_v43 }
  0x9e   :  { %411 = vmatmul.mubr.bf16.gmra.mrb[8].mxu0 %v2639_v30  ;;  %873 = vmatprep.subr.bf16.mxu1 %v2686_v44  ;;  %v2724_v44 = vld [vmem:[#allocation8 + $0x74] ss:$8 sps:$4 sm:$0xff]  }
  0x9f   :  { %420 = vmatprep.mubr.bf16.mxu0 %v2971_v0 }
  0xa1   :  { %874 = vmatpush1.bf16.msra.mxu1 %v2688_v46 }
  0xa2   :  { %875 = vmatprep.subr.bf16.mxu1 %v2689_v47 }
  0xa5   :  { %876 = vmatpush1.bf16.msra.mxu1 %v2691_v48 }
  0xa6   :  { %421 = vmatmul.mubr.bf16.gmra.mrb[12].mxu0 %v2640_v35  ;;  %877 = vmatprep.subr.bf16.mxu1 %v2692_v49  ;;  %v2721_v35 = vld [vmem:[#allocation8 + $0x64] ss:$8 sps:$4 sm:$0xff]  }
  0xa7   :  { %430 = vmatprep.mubr.bf16.mxu0 %v2971_v0 }
  0xa9   :  { %878 = vmatpush1.bf16.msra.mxu1 %v2694_v55 }
  0xaa   :  { %879 = vmatprep.subr.bf16.mxu1 %v2695_v57 }
  0xad   :  { %880 = vmatpush1.bf16.msra.mxu1 %v2697_v58 }
  0xae   :  { %431 = vmatmul.mubr.bf16.gmra.mrb[16].mxu0 %v2641_v40  ;;  %881 = vmatprep.subr.bf16.mxu1 %v2698_v59 }
  0xaf   :  { %440 = vmatprep.mubr.bf16.mxu0 %v2971_v0 }
  0xb1   :  { %882 = vmatpush1.bf16.msra.mxu1 %v2700_v60  ;;  %v2725_v60 = vld [vmem:[#allocation8 + $0x80] ss:$8 sps:$4 sm:$0xff]  }
  0xb6   :  { %441 = vmatmul.mubr.bf16.gmra.mrb[20].mxu0 %v2642_v45 }
  0xb7   :  { %450 = vmatprep.mubr.bf16.mxu0 %v2971_v0 }
  0xbe   :  { %451 = vmatmul.mubr.bf16.gmra.mrb[24].mxu0 %v2643_v50  ;;  %v2722_v50 = vld [vmem:[#allocation8 + $0x70] ss:$8 sps:$4 sm:$0xff]  }
  0xbf   :  { %460 = vmatprep.mubr.bf16.mxu0 %v2971_v0 }
  0xc6   :  { %461 = vmatmul.mubr.bf16.gmra.mrb[28].mxu0 %v2644_v51 }
  0xc7   :  { %470 = vmatprep.mubr.bf16.mxu0 %v2971_v0 }
  0xce   :  { %471 = vmatmul.mubr.bf16.gmra.mrb[32].mxu0 %v2645_v52 }
  0xcf   :  { %480 = vmatprep.mubr.bf16.mxu0 %v2971_v0 }
  0xd6   :  { %481 = vmatmul.mubr.bf16.gmra.mrb[36].mxu0 %v2646_v53  ;;  %v2727_v53 = vld [vmem:[#allocation8 + $0x84] ss:$8 sps:$4 sm:$0xff]  }
  0xd7   :  { %490 = vmatprep.mubr.bf16.mxu0 %v2971_v0 }
  0xde   :  { %491 = vmatmul.mubr.bf16.gmra.mrb[40].mxu0 %v2647_v54 }
  0xdf   :  { %500 = vmatprep.mubr.bf16.mxu0 %v2971_v0 }
  0xe6   :  { %501 = vmatmul.mubr.bf16.gmra.mrb[44].mxu0 %v2648_v56 }
  0xe7   :  { %510 = vmatprep.mubr.bf16.mxu0 %v2971_v0 }
  0xee   :  { %511 = vmatmul.mubr.bf16.gmra.mrb[48].mxu0 %v2649_v61 }
  0xef   :  { %520 = vmatprep.mubr.bf16.mxu0 %v2971_v0 }
  0xf6   :  { %521 = vmatmul.mubr.bf16.gmra.mrb[52].mxu0 %v2650_v62  ;;  %v2730_v62 = vld [vmem:[#allocation8 + $0x94] ss:$8 sps:$4 sm:$0xff]  }
  0xf7   :  { %530 = vmatprep.mubr.bf16.mxu0 %v2971_v0 }
  0xfe   :  { %531 = vmatmul.mubr.bf16.gmra.mrb[56].mxu0 %v2651_v63 }
  0xff   :  { %540 = vmatprep.mubr.bf16.mxu0 %v2971_v0  ;;  %v2707_v0 = vld [vmem:[#allocation8 + $0x20] ss:$8 sps:$4 sm:$0xff]  }
 0x100   :  { %1349 = vmatpush1.bf16.msra.mxu0 %v2707_v0 }
 0x101   :  { %1350 = vmatprep.subr.bf16.mxu0 %v2712_v16 }
 0x104   :  { %1351 = vmatpush1.bf16.msra.mxu0 %v2710_v15 }
 0x105   :  { %1352 = vmatprep.subr.bf16.mxu0 %v2715_v24 }
 0x106   :  { %541 = vmatmul.mubr.bf16.gmra.mrb[60].mxu0 %v2652_v1 }
 0x108   :  { %1353 = vmatpush1.bf16.msra.mxu0 %v2713_v23 }
 0x109   :  { %1354 = vmatprep.subr.bf16.mxu0 %v2718_v26  ;;  %v2734_v26 = vld [vmem:[#allocation8 + $0xb0] ss:$8 sps:$4 sm:$0xff]  }
 0x10c   :  { %1355 = vmatpush1.bf16.msra.mxu0 %v2716_v32 }
 0x10d   :  { %1356 = vmatprep.subr.bf16.mxu0 %v2721_v35 }
 0x110   :  { %1357 = vmatpush1.bf16.msra.mxu0 %v2719_v42 }
 0x111   :  { %1358 = vmatprep.subr.bf16.mxu0 %v2724_v44  ;;  %v2740_v44 = vld [vmem:[#allocation8 + $0xd0] ss:$8 sps:$4 sm:$0xff]  }
 0x114   :  { %1359 = vmatpush1.bf16.msra.mxu0 %v2722_v50 }
 0x115   :  { %1360 = vmatprep.subr.bf16.mxu0 %v2727_v53 }
 0x118   :  { %1361 = vmatpush1.bf16.msra.mxu0 %v2725_v60 }
 0x119   :  { %1362 = vmatprep.subr.bf16.mxu0 %v2730_v62 }
 0x11c   :  { %1363 = vmatpush1.bf16.msra.mxu0 %v2728_v5 }
 0x11d   :  { %1364 = vmatprep.subr.bf16.mxu0 %v2733_v9 }
 0x161   :  { %v392_v14 = vpop.f32.mrb[0].mxu0 }
 0x162   :  { %v393_v17 = vadd.f32 %v392_v14, %v3144_v12  ;;  %v394_v18 = vpop.f32.mrb[1].mxu0 }
 0x163   :  { %v395_v19 = vadd.f32 %v394_v18, %v3147_v13  ;;  %v396_v20 = vpop.f32.mrb[2].mxu0  ;;  %v2731_v18 = vld [vmem:[#allocation8 + $0xa0] ss:$8 sps:$4 sm:$0xff]  }
 0x164   :  { %v397_v21 = vadd.f32 %v396_v20, %v3144_v12  ;;  %v398_v22 = vpop.f32.mrb[3].mxu0  ;;  %v551_v27 = vmax.f32 %v393_v17, 0.0  ;;  %v2736_v20 = vld [vmem:[#allocation8 + $0xb4] ss:$8 sps:$4 sm:$0xff]   ;;  %1365 = vmatpush1.bf16.msra.mxu0 %v2731_v18 }
 0x165   :  { %v399_v25 = vadd.f32 %v398_v22, %v3147_v13  ;;  %v552_v29 = vmax.f32 %v395_v19, 0.0  ;;  %1366 = vmatprep.subr.bf16.mxu0 %v2736_v20 }
 0x166   :  { %v553_v28 = vmax.f32 %v397_v21, 0.0 }
 0x167   :  { %v554_v30 = vmax.f32 %v399_v25, 0.0 }
 0x168   :  { %v615_v31 = vpack.c.bf16 %v553_v28, %v551_v27  ;;  %1367 = vmatpush1.bf16.msra.mxu0 %v2734_v26 }
 0x169   :  { %v402_v33 = vpop.f32.mrb[4].mxu0  ;;  %v616_v34 = vpack.c.bf16 %v554_v30, %v552_v29  ;;  %v2739_v29 = vld [vmem:[#allocation8 + $0xc4] ss:$8 sps:$4 sm:$0xff]  }
 0x16a   :  { %v403_v36 = vadd.f32 %v402_v33, %v3144_v12  ;;  %v404_v37 = vpop.f32.mrb[5].mxu0  ;;  %1368 = vmatprep.subr.bf16.mxu0 %v2739_v29 }
 0x16b   :  { %v405_v38 = vadd.f32 %v404_v37, %v3147_v13  ;;  %v406_v39 = vpop.f32.mrb[6].mxu0  ;;  %883 = vmatprep.mubr.bf16.mxu1 %v616_v34 }
 0x16c   :  { %v407_v40 = vadd.f32 %v406_v39, %v3144_v12  ;;  %v408_v41 = vpop.f32.mrb[7].mxu0  ;;  %884 = vmatmul.mubr.bf16.vlgmr.msra.gmra.mrb[0].mxu1 %v615_v31  ;;  %v555_v45 = vmax.f32 %v403_v36, 0.0  ;;  %v2737_v36 = vld [vmem:[#allocation8 + $0xc0] ss:$8 sps:$4 sm:$0xff]  }
 0x16d   :  { %v409_v43 = vadd.f32 %v408_v41, %v3147_v13  ;;  %v556_v47 = vmax.f32 %v405_v38, 0.0  ;;  %v2742_v38 = vld [vmem:[#allocation8 + $0xd4] ss:$8 sps:$4 sm:$0xff]   ;;  %1369 = vmatpush1.bf16.msra.mxu0 %v2737_v36 }
 0x16e   :  { %v557_v46 = vmax.f32 %v407_v40, 0.0  ;;  %1370 = vmatprep.subr.bf16.mxu0 %v2742_v38 }
 0x16f   :  { %v558_v48 = vmax.f32 %v409_v43, 0.0 }
 0x170   :  { %v617_v49 = vpack.c.bf16 %v557_v46, %v555_v45 }
 0x171   :  { %v618_v51 = vpack.c.bf16 %v558_v48, %v556_v47  ;;  %v412_v52 = vpop.f32.mrb[8].mxu0  ;;  %v2745_v47 = vld [vmem:[#allocation8 + $0xe4] ss:$8 sps:$4 sm:$0xff]   ;;  %1371 = vmatpush1.bf16.msra.mxu0 %v2740_v44 }
 0x172   :  { %v413_v54 = vadd.f32 %v412_v52, %v3144_v12  ;;  %v414_v55 = vpop.f32.mrb[9].mxu0  ;;  %1372 = vmatprep.subr.bf16.mxu0 %v2745_v47 }
 0x173   :  { %v415_v56 = vadd.f32 %v414_v55, %v3147_v13  ;;  %v416_v57 = vpop.f32.mrb[10].mxu0  ;;  %893 = vmatprep.mubr.bf16.mxu1 %v618_v51 }
 0x174   :  { %v417_v58 = vadd.f32 %v416_v57, %v3144_v12  ;;  %v418_v59 = vpop.f32.mrb[11].mxu0  ;;  %894 = vmatmul.mubr.bf16.gmra.mrb[4].mxu1 %v617_v49  ;;  %v559_v63 = vmax.f32 %v413_v54, 0.0  ;;  %v2743_v54 = vld [vmem:[#allocation8 + $0xe0] ss:$8 sps:$4 sm:$0xff]  }
 0x175   :  { %v419_v61 = vadd.f32 %v418_v59, %v3147_v13  ;;  %v560_v2 = vmax.f32 %v415_v56, 0.0  ;;  %1373 = vmatpush1.bf16.msra.mxu0 %v2743_v54 }
 0x176   :  { %v561_v1 = vmax.f32 %v417_v58, 0.0 }
 0x177   :  { %v562_v3 = vmax.f32 %v419_v61, 0.0 }
 0x178   :  { %v619_v4 = vpack.c.bf16 %v561_v1, %v559_v63 }
 0x179   :  { %v620_v6 = vpack.c.bf16 %v562_v3, %v560_v2  ;;  %v422_v7 = vpop.f32.mrb[12].mxu0 }
 0x17a   :  { %v423_v0 = vadd.f32 %v422_v7, %v3144_v12  ;;  %v424_v11 = vpop.f32.mrb[13].mxu0 }
 0x17b   :  { %v425_v14 = vadd.f32 %v424_v11, %v3147_v13  ;;  %v426_v15 = vpop.f32.mrb[14].mxu0  ;;  %903 = vmatprep.mubr.bf16.mxu1 %v620_v6 }
 0x17c   :  { %v427_v16 = vadd.f32 %v426_v15, %v3144_v12  ;;  %v428_v17 = vpop.f32.mrb[15].mxu0  ;;  %904 = vmatmul.mubr.bf16.gmra.mrb[8].mxu1 %v619_v4  ;;  %v563_v21 = vmax.f32 %v423_v0, 0.0 }
 0x17d   :  { %v429_v19 = vadd.f32 %v428_v17, %v3147_v13  ;;  %v564_v23 = vmax.f32 %v425_v14, 0.0 }
 0x17e   :  { %v565_v22 = vmax.f32 %v427_v16, 0.0 }
 0x17f   :  { %v566_v24 = vmax.f32 %v429_v19, 0.0 }
 0x180   :  { %v621_v25 = vpack.c.bf16 %v565_v22, %v563_v21 }
 0x181   :  { %v622_v27 = vpack.c.bf16 %v566_v24, %v564_v23  ;;  %v432_v28 = vpop.f32.mrb[16].mxu0 }
 0x182   :  { %v433_v30 = vadd.f32 %v432_v28, %v3144_v12  ;;  %v434_v31 = vpop.f32.mrb[17].mxu0 }
 0x183   :  { %v435_v32 = vadd.f32 %v434_v31, %v3147_v13  ;;  %v436_v33 = vpop.f32.mrb[18].mxu0  ;;  %913 = vmatprep.mubr.bf16.mxu1 %v622_v27 }
 0x184   :  { %v437_v34 = vadd.f32 %v436_v33, %v3144_v12  ;;  %v438_v35 = vpop.f32.mrb[19].mxu0  ;;  %914 = vmatmul.mubr.bf16.gmra.mrb[12].mxu1 %v621_v25  ;;  %v567_v39 = vmax.f32 %v433_v30, 0.0 }
 0x185   :  { %v439_v37 = vadd.f32 %v438_v35, %v3147_v13  ;;  %v568_v41 = vmax.f32 %v435_v32, 0.0 }
 0x186   :  { %v569_v40 = vmax.f32 %v437_v34, 0.0 }
 0x187   :  { %v570_v42 = vmax.f32 %v439_v37, 0.0 }
 0x188   :  { %v623_v43 = vpack.c.bf16 %v569_v40, %v567_v39 }
 0x189   :  { %v624_v45 = vpack.c.bf16 %v570_v42, %v568_v41  ;;  %v442_v46 = vpop.f32.mrb[20].mxu0 }
 0x18a   :  { %v443_v48 = vadd.f32 %v442_v46, %v3144_v12  ;;  %v444_v49 = vpop.f32.mrb[21].mxu0 }
 0x18b   :  { %v445_v50 = vadd.f32 %v444_v49, %v3147_v13  ;;  %v446_v51 = vpop.f32.mrb[22].mxu0  ;;  %923 = vmatprep.mubr.bf16.mxu1 %v624_v45 }
 0x18c   :  { %v447_v52 = vadd.f32 %v446_v51, %v3144_v12  ;;  %v448_v53 = vpop.f32.mrb[23].mxu0  ;;  %924 = vmatmul.mubr.bf16.gmra.mrb[16].mxu1 %v623_v43  ;;  %v571_v56 = vmax.f32 %v443_v48, 0.0 }
 0x18d   :  { %v449_v55 = vadd.f32 %v448_v53, %v3147_v13  ;;  %v572_v58 = vmax.f32 %v445_v50, 0.0 }
 0x18e   :  { %v573_v57 = vmax.f32 %v447_v52, 0.0 }
 0x18f   :  { %v574_v59 = vmax.f32 %v449_v55, 0.0 }
 0x190   :  { %v625_v60 = vpack.c.bf16 %v573_v57, %v571_v56 }
 0x191   :  { %v626_v61 = vpack.c.bf16 %v574_v59, %v572_v58  ;;  %v452_v62 = vpop.f32.mrb[24].mxu0 }
 0x192   :  { %v453_v63 = vadd.f32 %v452_v62, %v3144_v12  ;;  %v454_v1 = vpop.f32.mrb[25].mxu0 }
 0x193   :  { %v455_v2 = vadd.f32 %v454_v1, %v3147_v13  ;;  %v456_v3 = vpop.f32.mrb[26].mxu0  ;;  %933 = vmatprep.mubr.bf16.mxu1 %v626_v61 }
 0x194   :  { %v457_v4 = vadd.f32 %v456_v3, %v3144_v12  ;;  %v458_v5 = vpop.f32.mrb[27].mxu0  ;;  %934 = vmatmul.mubr.bf16.gmra.mrb[20].mxu1 %v625_v60  ;;  %v575_v7 = vmax.f32 %v453_v63, 0.0 }
 0x195   :  { %v459_v6 = vadd.f32 %v458_v5, %v3147_v13  ;;  %v576_v0 = vmax.f32 %v455_v2, 0.0 }
 0x196   :  { %v577_v9 = vmax.f32 %v457_v4, 0.0 }
 0x197   :  { %v578_v11 = vmax.f32 %v459_v6, 0.0 }
 0x198   :  { %v627_v14 = vpack.c.bf16 %v577_v9, %v575_v7 }
 0x199   :  { %v628_v15 = vpack.c.bf16 %v578_v11, %v576_v0  ;;  %v462_v16 = vpop.f32.mrb[28].mxu0 }
 0x19a   :  { %v463_v17 = vadd.f32 %v462_v16, %v3144_v12  ;;  %v464_v18 = vpop.f32.mrb[29].mxu0 }
 0x19b   :  { %v465_v19 = vadd.f32 %v464_v18, %v3147_v13  ;;  %v466_v20 = vpop.f32.mrb[30].mxu0  ;;  %943 = vmatprep.mubr.bf16.mxu1 %v628_v15 }
 0x19c   :  { %v467_v21 = vadd.f32 %v466_v20, %v3144_v12  ;;  %v468_v22 = vpop.f32.mrb[31].mxu0  ;;  %944 = vmatmul.mubr.bf16.gmra.mrb[24].mxu1 %v627_v14  ;;  %v579_v24 = vmax.f32 %v463_v17, 0.0 }
 0x19d   :  { %v469_v23 = vadd.f32 %v468_v22, %v3147_v13  ;;  %v580_v26 = vmax.f32 %v465_v19, 0.0 }
 0x19e   :  { %v581_v25 = vmax.f32 %v467_v21, 0.0 }
 0x19f   :  { %v582_v27 = vmax.f32 %v469_v23, 0.0 }
 0x1a0   :  { %v629_v28 = vpack.c.bf16 %v581_v25, %v579_v24 }
 0x1a1   :  { %v630_v29 = vpack.c.bf16 %v582_v27, %v580_v26  ;;  %v472_v30 = vpop.f32.mrb[32].mxu0 }
 0x1a2   :  { %v473_v31 = vadd.f32 %v472_v30, %v3144_v12  ;;  %v474_v32 = vpop.f32.mrb[33].mxu0 }
 0x1a3   :  { %v475_v33 = vadd.f32 %v474_v32, %v3147_v13  ;;  %v476_v34 = vpop.f32.mrb[34].mxu0  ;;  %953 = vmatprep.mubr.bf16.mxu1 %v630_v29 }
 0x1a4   :  { %v477_v35 = vadd.f32 %v476_v34, %v3144_v12  ;;  %v478_v36 = vpop.f32.mrb[35].mxu0  ;;  %954 = vmatmul.mubr.bf16.gmra.mrb[28].mxu1 %v629_v28  ;;  %v583_v38 = vmax.f32 %v473_v31, 0.0 }
 0x1a5   :  { %v479_v37 = vadd.f32 %v478_v36, %v3147_v13  ;;  %v584_v40 = vmax.f32 %v475_v33, 0.0  ;;  %v2748_v33 = vld [vmem:[#allocation8 + $0xf4] ss:$8 sps:$4 sm:$0xff]  }
 0x1a6   :  { %v585_v39 = vmax.f32 %v477_v35, 0.0  ;;  %v2746_v35 = vld [vmem:[#allocation8 + $0xf0] ss:$8 sps:$4 sm:$0xff]   ;;  %1374 = vmatprep.subr.bf16.mxu0 %v2748_v33  ;;  %v2760_v33 = vld [vmem:[#allocation10 + $0x34] ss:$8 sps:$4 sm:$0xff]  }
 0x1a7   :  { %v586_v41 = vmax.f32 %v479_v37, 0.0  ;;  %1375 = vmatpush1.bf16.msra.mxu0 %v2746_v35 }
 0x1a8   :  { %v631_v42 = vpack.c.bf16 %v585_v39, %v583_v38 }
 0x1a9   :  { %v632_v43 = vpack.c.bf16 %v586_v41, %v584_v40  ;;  %v482_v44 = vpop.f32.mrb[36].mxu0 }
 0x1aa   :  { %v483_v45 = vadd.f32 %v482_v44, %v3144_v12  ;;  %v484_v46 = vpop.f32.mrb[37].mxu0 }
 0x1ab   :  { %v485_v47 = vadd.f32 %v484_v46, %v3147_v13  ;;  %v486_v48 = vpop.f32.mrb[38].mxu0  ;;  %963 = vmatprep.mubr.bf16.mxu1 %v632_v43 }
 0x1ac   :  { %v487_v49 = vadd.f32 %v486_v48, %v3144_v12  ;;  %v488_v50 = vpop.f32.mrb[39].mxu0  ;;  %964 = vmatmul.mubr.bf16.gmra.mrb[32].mxu1 %v631_v42  ;;  %v587_v52 = vmax.f32 %v483_v45, 0.0 }
 0x1ad   :  { %v489_v51 = vadd.f32 %v488_v50, %v3147_v13  ;;  %v588_v54 = vmax.f32 %v485_v47, 0.0 }
 0x1ae   :  { %v589_v53 = vmax.f32 %v487_v49, 0.0 }
 0x1af   :  { %v590_v55 = vmax.f32 %v489_v51, 0.0 }
 0x1b0   :  { %v633_v56 = vpack.c.bf16 %v589_v53, %v587_v52 }
 0x1b1   :  { %v634_v57 = vpack.c.bf16 %v590_v55, %v588_v54  ;;  %v492_v58 = vpop.f32.mrb[40].mxu0 }
 0x1b2   :  { %v493_v59 = vadd.f32 %v492_v58, %v3144_v12  ;;  %v494_v60 = vpop.f32.mrb[41].mxu0 }
 0x1b3   :  { %v495_v61 = vadd.f32 %v494_v60, %v3147_v13  ;;  %v496_v62 = vpop.f32.mrb[42].mxu0  ;;  %973 = vmatprep.mubr.bf16.mxu1 %v634_v57 }
 0x1b4   :  { %v497_v63 = vadd.f32 %v496_v62, %v3144_v12  ;;  %v498_v1 = vpop.f32.mrb[43].mxu0  ;;  %974 = vmatmul.mubr.bf16.gmra.mrb[36].mxu1 %v633_v56  ;;  %v591_v3 = vmax.f32 %v493_v59, 0.0 }
 0x1b5   :  { %v499_v2 = vadd.f32 %v498_v1, %v3147_v13  ;;  %v592_v5 = vmax.f32 %v495_v61, 0.0 }
 0x1b6   :  { %v593_v4 = vmax.f32 %v497_v63, 0.0 }
 0x1b7   :  { %v594_v6 = vmax.f32 %v499_v2, 0.0 }
 0x1b8   :  { %v635_v7 = vpack.c.bf16 %v593_v4, %v591_v3 }
 0x1b9   :  { %v636_v9 = vpack.c.bf16 %v594_v6, %v592_v5  ;;  %v502_v0 = vpop.f32.mrb[44].mxu0 }
 0x1ba   :  { %v503_v11 = vadd.f32 %v502_v0, %v3144_v12  ;;  %v504_v14 = vpop.f32.mrb[45].mxu0 }
 0x1bb   :  { %v505_v15 = vadd.f32 %v504_v14, %v3147_v13  ;;  %v506_v16 = vpop.f32.mrb[46].mxu0  ;;  %983 = vmatprep.mubr.bf16.mxu1 %v636_v9 }
 0x1bc   :  { %v507_v17 = vadd.f32 %v506_v16, %v3144_v12  ;;  %v508_v18 = vpop.f32.mrb[47].mxu0  ;;  %984 = vmatmul.mubr.bf16.gmra.mrb[40].mxu1 %v635_v7  ;;  %v595_v20 = vmax.f32 %v503_v11, 0.0 }
 0x1bd   :  { %v509_v19 = vadd.f32 %v508_v18, %v3147_v13  ;;  %v596_v22 = vmax.f32 %v505_v15, 0.0 }
 0x1be   :  { %v597_v21 = vmax.f32 %v507_v17, 0.0 }
 0x1bf   :  { %v598_v23 = vmax.f32 %v509_v19, 0.0 }
 0x1c0   :  { %v637_v24 = vpack.c.bf16 %v597_v21, %v595_v20 }
 0x1c1   :  { %v638_v25 = vpack.c.bf16 %v598_v23, %v596_v22  ;;  %v512_v26 = vpop.f32.mrb[48].mxu0 }
 0x1c2   :  { %v513_v27 = vadd.f32 %v512_v26, %v3144_v12  ;;  %v514_v28 = vpop.f32.mrb[49].mxu0  ;;  %v2752_v26 = vld [vmem:[#allocation10 + $0x10] ss:$8 sps:$4 sm:$0xff]  }
 0x1c3   :  { %v515_v29 = vadd.f32 %v514_v28, %v3147_v13  ;;  %v516_v30 = vpop.f32.mrb[50].mxu0  ;;  %993 = vmatprep.mubr.bf16.mxu1 %v638_v25  ;;  %v2751_v25 = vld [vmem:[#allocation10 + $0x4] ss:$8 sps:$4 sm:$0xff]  }
 0x1c4   :  { %v517_v31 = vadd.f32 %v516_v30, %v3144_v12  ;;  %v518_v32 = vpop.f32.mrb[51].mxu0  ;;  %994 = vmatmul.mubr.bf16.gmra.mrb[44].mxu1 %v637_v24  ;;  %v599_v36 = vmax.f32 %v513_v27, 0.0  ;;  %v2749_v24 = vld [vmem:[#allocation10] ss:$8 sps:$4 sm:$0xff]   ;;  %1837 = vmatprep.subr.bf16.mxu1 %v2751_v25  ;;  %v2754_v27 = vld [vmem:[#allocation10 + $0x14] ss:$8 sps:$4 sm:$0xff]  }
 0x1c5   :  { %v519_v34 = vadd.f32 %v518_v32, %v3147_v13  ;;  %v600_v38 = vmax.f32 %v515_v29, 0.0  ;;  %1838 = vmatpush1.bf16.msra.mxu1 %v2749_v24  ;;  %v2757_v28 = vld [vmem:[#allocation10 + $0x24] ss:$8 sps:$4 sm:$0xff]   ;;  %v2758_v32 = vld [vmem:[#allocation10 + $0x30] ss:$8 sps:$4 sm:$0xff]  }
 0x1c6   :  { %v601_v37 = vmax.f32 %v517_v31, 0.0  ;;  %1839 = vmatprep.subr.bf16.mxu1 %v2754_v27  ;;  %v2776_v25 = vld [vmem:[#allocation10 + $0x90] ss:$8 sps:$4 sm:$0xff]  }
 0x1c7   :  { %v602_v39 = vmax.f32 %v519_v34, 0.0 }
 0x1c8   :  { %v639_v40 = vpack.c.bf16 %v601_v37, %v599_v36 }
 0x1c9   :  { %v640_v41 = vpack.c.bf16 %v602_v39, %v600_v38  ;;  %v522_v42 = vpop.f32.mrb[52].mxu0  ;;  %1840 = vmatpush1.bf16.msra.mxu1 %v2752_v26 }
 0x1ca   :  { %v523_v43 = vadd.f32 %v522_v42, %v3144_v12  ;;  %v524_v44 = vpop.f32.mrb[53].mxu0  ;;  %1841 = vmatprep.subr.bf16.mxu1 %v2757_v28 }
 0x1cb   :  { %v525_v45 = vadd.f32 %v524_v44, %v3147_v13  ;;  %v526_v46 = vpop.f32.mrb[54].mxu0  ;;  %1003 = vmatprep.mubr.bf16.mxu1 %v640_v41  ;;  %v2763_v41 = vld [vmem:[#allocation10 + $0x44] ss:$8 sps:$4 sm:$0xff]  }
 0x1cc   :  { %v527_v47 = vadd.f32 %v526_v46, %v3144_v12  ;;  %v528_v48 = vpop.f32.mrb[55].mxu0  ;;  %1004 = vmatmul.mubr.bf16.gmra.mrb[48].mxu1 %v639_v40  ;;  %v603_v50 = vmax.f32 %v523_v43, 0.0  ;;  %v2761_v40 = vld [vmem:[#allocation10 + $0x40] ss:$8 sps:$4 sm:$0xff]   ;;  %v2766_v43 = vld [vmem:[#allocation10 + $0x54] ss:$8 sps:$4 sm:$0xff]  }
 0x1cd   :  { %v529_v49 = vadd.f32 %v528_v48, %v3147_v13  ;;  %v604_v52 = vmax.f32 %v525_v45, 0.0 }
 0x1ce   :  { %v605_v51 = vmax.f32 %v527_v47, 0.0 }
 0x1cf   :  { %v606_v53 = vmax.f32 %v529_v49, 0.0  ;;  %v2764_v49 = vld [vmem:[#allocation10 + $0x50] ss:$8 sps:$4 sm:$0xff]  }
 0x1d0   :  { %v641_v54 = vpack.c.bf16 %v605_v51, %v603_v50 }
 0x1d1   :  { %v642_v55 = vpack.c.bf16 %v606_v53, %v604_v52  ;;  %v532_v56 = vpop.f32.mrb[56].mxu0  ;;  %v2769_v52 = vld [vmem:[#allocation10 + $0x64] ss:$8 sps:$4 sm:$0xff]  }
 0x1d2   :  { %v533_v57 = vadd.f32 %v532_v56, %v3144_v12  ;;  %v534_v58 = vpop.f32.mrb[57].mxu0 }
 0x1d3   :  { %v535_v59 = vadd.f32 %v534_v58, %v3147_v13  ;;  %v536_v60 = vpop.f32.mrb[58].mxu0  ;;  %1013 = vmatprep.mubr.bf16.mxu1 %v642_v55 }
 0x1d4   :  { %v537_v61 = vadd.f32 %v536_v60, %v3144_v12  ;;  %v538_v62 = vpop.f32.mrb[59].mxu0  ;;  %1014 = vmatmul.mubr.bf16.gmra.mrb[52].mxu1 %v641_v54  ;;  %v607_v1 = vmax.f32 %v533_v57, 0.0 }
 0x1d5   :  { %v539_v63 = vadd.f32 %v538_v62, %v3147_v13  ;;  %v608_v3 = vmax.f32 %v535_v59, 0.0  ;;  %v2767_v59 = vld [vmem:[#allocation10 + $0x60] ss:$8 sps:$4 sm:$0xff]  }
 0x1d6   :  { %v609_v2 = vmax.f32 %v537_v61, 0.0  ;;  %v2772_v61 = vld [vmem:[#allocation10 + $0x74] ss:$8 sps:$4 sm:$0xff]  }
 0x1d7   :  { %v610_v4 = vmax.f32 %v539_v63, 0.0 }
 0x1d8   :  { %v643_v5 = vpack.c.bf16 %v609_v2, %v607_v1 }
 0x1d9   :  { %v644_v6 = vpack.c.bf16 %v610_v4, %v608_v3  ;;  %v542_v7 = vpop.f32.mrb[60].mxu0  ;;  %v2770_v4 = vld [vmem:[#allocation10 + $0x70] ss:$8 sps:$4 sm:$0xff]  }
 0x1da   :  { %v543_v9 = vadd.f32 %v542_v7, %v3144_v12  ;;  %v544_v0 = vpop.f32.mrb[61].mxu0  ;;  %v2775_v7 = vld [vmem:[#allocation10 + $0x84] ss:$8 sps:$4 sm:$0xff]  }
 0x1db   :  { %v545_v11 = vadd.f32 %v544_v0, %v3147_v13  ;;  %v546_v14 = vpop.f32.mrb[62].mxu0  ;;  %1023 = vmatprep.mubr.bf16.mxu1 %v644_v6 }
 0x1dc   :  { %v547_v15 = vadd.f32 %v546_v14, %v3144_v12  ;;  %v548_v16 = vpop.f32.mrb[63].mxu0  ;;  %1024 = vmatmul.mubr.bf16.gmra.mrb[56].mxu1 %v643_v5  ;;  %v611_v18 = vmax.f32 %v543_v9, 0.0  ;;  %v679_v12 = vld [vmem:[%s3455_s4] sm:$0x3] }
 0x1dd   :  { %v549_v17 = vadd.f32 %v548_v16, %v3147_v13  ;;  %v612_v20 = vmax.f32 %v545_v11, 0.0  ;;  %v2755_v13 = vld [vmem:[#allocation10 + $0x20] ss:$8 sps:$4 sm:$0xff]   ;;  %v3217_v29 = vrot.slane %v679_v12, %v3136_v8  ;;  %v3220_v30 = vrot.slane %v679_v12, %v3141_v10  ;;  %v2781_v12 = vld [vmem:[#allocation10 + $0xa4] ss:$8 sps:$4 sm:$0xff]  }
 0x1de   :  { %v613_v19 = vmax.f32 %v547_v15, 0.0  ;;  %1842 = vmatpush1.bf16.msra.mxu1 %v2755_v13 }
 0x1df   :  { %v614_v21 = vmax.f32 %v549_v17, 0.0  ;;  %1843 = vmatprep.subr.bf16.mxu1 %v2760_v33  ;;  %v2773_v17 = vld [vmem:[#allocation10 + $0x80] ss:$8 sps:$4 sm:$0xff]  }
 0x1e0   :  { %v645_v22 = vpack.c.bf16 %v613_v19, %v611_v18  ;;  %v2778_v19 = vld [vmem:[#allocation10 + $0x94] ss:$8 sps:$4 sm:$0xff]  }
 0x1e1   :  { %v646_v23 = vpack.c.bf16 %v614_v21, %v612_v20 }
 0x1e2   :  { %1844 = vmatpush1.bf16.msra.mxu1 %v2758_v32 }
 0x1e3   :  { %1033 = vmatprep.mubr.bf16.mxu1 %v646_v23  ;;  %1845 = vmatprep.subr.bf16.mxu1 %v2763_v41 }
 0x1e4   :  { %1034 = vmatmul.mubr.bf16.gmra.mrb[60].mxu1 %v645_v22 }
 0x1e6   :  { %1846 = vmatpush1.bf16.msra.mxu1 %v2761_v40 }
 0x1e7   :  { %1847 = vmatprep.subr.bf16.mxu1 %v2766_v43  ;;  %v2782_v43 = vld [vmem:[#allocation10 + $0xb0] ss:$8 sps:$4 sm:$0xff]  }
 0x1ea   :  { %1848 = vmatpush1.bf16.msra.mxu1 %v2764_v49 }
 0x1eb   :  { %1849 = vmatprep.subr.bf16.mxu1 %v2769_v52 }
 0x1ee   :  { %1850 = vmatpush1.bf16.msra.mxu1 %v2767_v59 }
 0x1ef   :  { %1851 = vmatprep.subr.bf16.mxu1 %v2772_v61  ;;  %v2788_v61 = vld [vmem:[#allocation10 + $0xd0] ss:$8 sps:$4 sm:$0xff]  }
 0x1f2   :  { %1852 = vmatpush1.bf16.msra.mxu1 %v2770_v4 }
 0x1f3   :  { %1853 = vmatprep.subr.bf16.mxu1 %v2775_v7 }
 0x1f6   :  { %1854 = vmatpush1.bf16.msra.mxu1 %v2773_v17 }
 0x1f7   :  { %1855 = vmatprep.subr.bf16.mxu1 %v2778_v19 }
 0x1fa   :  { %1856 = vmatpush1.bf16.msra.mxu1 %v2776_v25 }
 0x1fb   :  { %1857 = vmatprep.subr.bf16.mxu1 %v2781_v12 }
 0x23f   :  { %v885_v31 = vpop.f32.mrb[0].mxu1 }
 0x240   :  { %v886_v34 = vadd.f32 %v885_v31, %v3217_v29  ;;  %v887_v35 = vpop.f32.mrb[1].mxu1 }
 0x241   :  { %v888_v36 = vadd.f32 %v887_v35, %v3220_v30  ;;  %v889_v37 = vpop.f32.mrb[2].mxu1  ;;  %v2779_v35 = vld [vmem:[#allocation10 + $0xa0] ss:$8 sps:$4 sm:$0xff]  }
 0x242   :  { %v890_v38 = vadd.f32 %v889_v37, %v3217_v29  ;;  %v891_v39 = vpop.f32.mrb[3].mxu1  ;;  %v1044_v44 = vmax.f32 %v886_v34, 0.0  ;;  %v2784_v37 = vld [vmem:[#allocation10 + $0xb4] ss:$8 sps:$4 sm:$0xff]   ;;  %1858 = vmatpush1.bf16.msra.mxu1 %v2779_v35 }
 0x243   :  { %v892_v42 = vadd.f32 %v891_v39, %v3220_v30  ;;  %v1045_v46 = vmax.f32 %v888_v36, 0.0  ;;  %1859 = vmatprep.subr.bf16.mxu1 %v2784_v37 }
 0x244   :  { %v1046_v45 = vmax.f32 %v890_v38, 0.0 }
 0x245   :  { %v1047_v47 = vmax.f32 %v892_v42, 0.0 }
 0x246   :  { %v1108_v48 = vpack.c.bf16 %v1046_v45, %v1044_v44  ;;  %1860 = vmatpush1.bf16.msra.mxu1 %v2782_v43 }
 0x247   :  { %v1109_v50 = vpack.c.bf16 %v1047_v47, %v1045_v46  ;;  %v895_v51 = vpop.f32.mrb[4].mxu1  ;;  %v2787_v46 = vld [vmem:[#allocation10 + $0xc4] ss:$8 sps:$4 sm:$0xff]  }
 0x248   :  { %v896_v53 = vadd.f32 %v895_v51, %v3217_v29  ;;  %v897_v54 = vpop.f32.mrb[5].mxu1  ;;  %1861 = vmatprep.subr.bf16.mxu1 %v2787_v46 }
 0x249   :  { %v898_v55 = vadd.f32 %v897_v54, %v3220_v30  ;;  %v899_v56 = vpop.f32.mrb[6].mxu1  ;;  %1376 = vmatprep.mubr.bf16.mxu0 %v1109_v50 }
 0x24a   :  { %v900_v57 = vadd.f32 %v899_v56, %v3217_v29  ;;  %v901_v58 = vpop.f32.mrb[7].mxu1  ;;  %1377 = vmatmul.mubr.bf16.vlgmr.msra.gmra.mrb[64].mxu0 %v1108_v48  ;;  %v1048_v62 = vmax.f32 %v896_v53, 0.0  ;;  %v2785_v53 = vld [vmem:[#allocation10 + $0xc0] ss:$8 sps:$4 sm:$0xff]  }
 0x24b   :  { %v902_v60 = vadd.f32 %v901_v58, %v3220_v30  ;;  %v1049_v1 = vmax.f32 %v898_v55, 0.0  ;;  %v2790_v55 = vld [vmem:[#allocation10 + $0xd4] ss:$8 sps:$4 sm:$0xff]   ;;  %1862 = vmatpush1.bf16.msra.mxu1 %v2785_v53 }
 0x24c   :  { %v1050_v63 = vmax.f32 %v900_v57, 0.0  ;;  %1863 = vmatprep.subr.bf16.mxu1 %v2790_v55 }
 0x24d   :  { %v1051_v2 = vmax.f32 %v902_v60, 0.0 }
 0x24e   :  { %v1110_v3 = vpack.c.bf16 %v1050_v63, %v1048_v62 }
 0x24f   :  { %v1111_v5 = vpack.c.bf16 %v1051_v2, %v1049_v1  ;;  %v905_v6 = vpop.f32.mrb[8].mxu1  ;;  %v2793_v1 = vld [vmem:[#allocation10 + $0xe4] ss:$8 sps:$4 sm:$0xff]   ;;  %1864 = vmatpush1.bf16.msra.mxu1 %v2788_v61 }
 0x250   :  { %v906_v9 = vadd.f32 %v905_v6, %v3217_v29  ;;  %v907_v0 = vpop.f32.mrb[9].mxu1  ;;  %1865 = vmatprep.subr.bf16.mxu1 %v2793_v1 }
 0x251   :  { %v908_v11 = vadd.f32 %v907_v0, %v3220_v30  ;;  %v909_v14 = vpop.f32.mrb[10].mxu1  ;;  %1386 = vmatprep.mubr.bf16.mxu0 %v1111_v5 }
 0x252   :  { %v910_v15 = vadd.f32 %v909_v14, %v3217_v29  ;;  %v911_v16 = vpop.f32.mrb[11].mxu1  ;;  %1387 = vmatmul.mubr.bf16.gmra.mrb[68].mxu0 %v1110_v3  ;;  %v1052_v20 = vmax.f32 %v906_v9, 0.0  ;;  %v2791_v9 = vld [vmem:[#allocation10 + $0xe0] ss:$8 sps:$4 sm:$0xff]  }
 0x253   :  { %v912_v18 = vadd.f32 %v911_v16, %v3220_v30  ;;  %v1053_v22 = vmax.f32 %v908_v11, 0.0  ;;  %1866 = vmatpush1.bf16.msra.mxu1 %v2791_v9 }
 0x254   :  { %v1054_v21 = vmax.f32 %v910_v15, 0.0 }
 0x255   :  { %v1055_v23 = vmax.f32 %v912_v18, 0.0 }
 0x256   :  { %v1112_v24 = vpack.c.bf16 %v1054_v21, %v1052_v20 }
 0x257   :  { %v1113_v26 = vpack.c.bf16 %v1055_v23, %v1053_v22  ;;  %v915_v27 = vpop.f32.mrb[12].mxu1 }
 0x258   :  { %v916_v13 = vadd.f32 %v915_v27, %v3217_v29  ;;  %v917_v28 = vpop.f32.mrb[13].mxu1 }
 0x259   :  { %v918_v31 = vadd.f32 %v917_v28, %v3220_v30  ;;  %v919_v32 = vpop.f32.mrb[14].mxu1  ;;  %1396 = vmatprep.mubr.bf16.mxu0 %v1113_v26 }
 0x25a   :  { %v920_v33 = vadd.f32 %v919_v32, %v3217_v29  ;;  %v921_v34 = vpop.f32.mrb[15].mxu1  ;;  %1397 = vmatmul.mubr.bf16.gmra.mrb[72].mxu0 %v1112_v24  ;;  %v1056_v38 = vmax.f32 %v916_v13, 0.0 }
 0x25b   :  { %v922_v36 = vadd.f32 %v921_v34, %v3220_v30  ;;  %v1057_v40 = vmax.f32 %v918_v31, 0.0 }
 0x25c   :  { %v1058_v39 = vmax.f32 %v920_v33, 0.0 }
 0x25d   :  { %v1059_v41 = vmax.f32 %v922_v36, 0.0 }
 0x25e   :  { %v1114_v42 = vpack.c.bf16 %v1058_v39, %v1056_v38 }
 0x25f   :  { %v1115_v44 = vpack.c.bf16 %v1059_v41, %v1057_v40  ;;  %v925_v45 = vpop.f32.mrb[16].mxu1 }
 0x260   :  { %v926_v47 = vadd.f32 %v925_v45, %v3217_v29  ;;  %v927_v48 = vpop.f32.mrb[17].mxu1 }
 0x261   :  { %v928_v49 = vadd.f32 %v927_v48, %v3220_v30  ;;  %v929_v50 = vpop.f32.mrb[18].mxu1  ;;  %1406 = vmatprep.mubr.bf16.mxu0 %v1115_v44 }
 0x262   :  { %v930_v51 = vadd.f32 %v929_v50, %v3217_v29  ;;  %v931_v52 = vpop.f32.mrb[19].mxu1  ;;  %1407 = vmatmul.mubr.bf16.gmra.mrb[76].mxu0 %v1114_v42  ;;  %v1060_v56 = vmax.f32 %v926_v47, 0.0 }
 0x263   :  { %v932_v54 = vadd.f32 %v931_v52, %v3220_v30  ;;  %v1061_v58 = vmax.f32 %v928_v49, 0.0 }
 0x264   :  { %v1062_v57 = vmax.f32 %v930_v51, 0.0 }
 0x265   :  { %v1063_v59 = vmax.f32 %v932_v54, 0.0 }
 0x266   :  { %v1116_v60 = vpack.c.bf16 %v1062_v57, %v1060_v56 }
 0x267   :  { %v1117_v62 = vpack.c.bf16 %v1063_v59, %v1061_v58  ;;  %v935_v63 = vpop.f32.mrb[20].mxu1 }
 0x268   :  { %v936_v2 = vadd.f32 %v935_v63, %v3217_v29  ;;  %v937_v3 = vpop.f32.mrb[21].mxu1 }
 0x269   :  { %v938_v4 = vadd.f32 %v937_v3, %v3220_v30  ;;  %v939_v5 = vpop.f32.mrb[22].mxu1  ;;  %1416 = vmatprep.mubr.bf16.mxu0 %v1117_v62 }
 0x26a   :  { %v940_v6 = vadd.f32 %v939_v5, %v3217_v29  ;;  %v941_v7 = vpop.f32.mrb[23].mxu1  ;;  %1417 = vmatmul.mubr.bf16.gmra.mrb[80].mxu0 %v1116_v60  ;;  %v1064_v11 = vmax.f32 %v936_v2, 0.0 }
 0x26b   :  { %v942_v0 = vadd.f32 %v941_v7, %v3220_v30  ;;  %v1065_v15 = vmax.f32 %v938_v4, 0.0 }
 0x26c   :  { %v1066_v14 = vmax.f32 %v940_v6, 0.0 }
 0x26d   :  { %v1067_v16 = vmax.f32 %v942_v0, 0.0 }
 0x26e   :  { %v1118_v17 = vpack.c.bf16 %v1066_v14, %v1064_v11 }
 0x26f   :  { %v1119_v18 = vpack.c.bf16 %v1067_v16, %v1065_v15  ;;  %v945_v19 = vpop.f32.mrb[24].mxu1 }
 0x270   :  { %v946_v20 = vadd.f32 %v945_v19, %v3217_v29  ;;  %v947_v21 = vpop.f32.mrb[25].mxu1 }
 0x271   :  { %v948_v22 = vadd.f32 %v947_v21, %v3220_v30  ;;  %v949_v23 = vpop.f32.mrb[26].mxu1  ;;  %1426 = vmatprep.mubr.bf16.mxu0 %v1119_v18 }
 0x272   :  { %v950_v24 = vadd.f32 %v949_v23, %v3217_v29  ;;  %v951_v25 = vpop.f32.mrb[27].mxu1  ;;  %1427 = vmatmul.mubr.bf16.gmra.mrb[84].mxu0 %v1118_v17  ;;  %v1068_v27 = vmax.f32 %v946_v20, 0.0 }
 0x273   :  { %v952_v26 = vadd.f32 %v951_v25, %v3220_v30  ;;  %v1069_v13 = vmax.f32 %v948_v22, 0.0 }
 0x274   :  { %v1070_v12 = vmax.f32 %v950_v24, 0.0 }
 0x275   :  { %v1071_v28 = vmax.f32 %v952_v26, 0.0 }
 0x276   :  { %v1120_v31 = vpack.c.bf16 %v1070_v12, %v1068_v27 }
 0x277   :  { %v1121_v32 = vpack.c.bf16 %v1071_v28, %v1069_v13  ;;  %v955_v33 = vpop.f32.mrb[28].mxu1 }
 0x278   :  { %v956_v34 = vadd.f32 %v955_v33, %v3217_v29  ;;  %v957_v35 = vpop.f32.mrb[29].mxu1 }
 0x279   :  { %v958_v36 = vadd.f32 %v957_v35, %v3220_v30  ;;  %v959_v37 = vpop.f32.mrb[30].mxu1  ;;  %1436 = vmatprep.mubr.bf16.mxu0 %v1121_v32 }
 0x27a   :  { %v960_v38 = vadd.f32 %v959_v37, %v3217_v29  ;;  %v961_v39 = vpop.f32.mrb[31].mxu1  ;;  %1437 = vmatmul.mubr.bf16.gmra.mrb[88].mxu0 %v1120_v31  ;;  %v1072_v41 = vmax.f32 %v956_v34, 0.0 }
 0x27b   :  { %v962_v40 = vadd.f32 %v961_v39, %v3220_v30  ;;  %v1073_v43 = vmax.f32 %v958_v36, 0.0 }
 0x27c   :  { %v1074_v42 = vmax.f32 %v960_v38, 0.0 }
 0x27d   :  { %v1075_v44 = vmax.f32 %v962_v40, 0.0 }
 0x27e   :  { %v1122_v45 = vpack.c.bf16 %v1074_v42, %v1072_v41 }
 0x27f   :  { %v1123_v46 = vpack.c.bf16 %v1075_v44, %v1073_v43  ;;  %v965_v47 = vpop.f32.mrb[32].mxu1 }
 0x280   :  { %v966_v48 = vadd.f32 %v965_v47, %v3217_v29  ;;  %v967_v49 = vpop.f32.mrb[33].mxu1 }
 0x281   :  { %v968_v50 = vadd.f32 %v967_v49, %v3220_v30  ;;  %v969_v51 = vpop.f32.mrb[34].mxu1  ;;  %1446 = vmatprep.mubr.bf16.mxu0 %v1123_v46 }
 0x282   :  { %v970_v52 = vadd.f32 %v969_v51, %v3217_v29  ;;  %v971_v53 = vpop.f32.mrb[35].mxu1  ;;  %1447 = vmatmul.mubr.bf16.gmra.mrb[92].mxu0 %v1122_v45  ;;  %v1076_v55 = vmax.f32 %v966_v48, 0.0 }
 0x283   :  { %v972_v54 = vadd.f32 %v971_v53, %v3220_v30  ;;  %v1077_v57 = vmax.f32 %v968_v50, 0.0  ;;  %v2796_v50 = vld [vmem:[#allocation10 + $0xf4] ss:$8 sps:$4 sm:$0xff]  }
 0x284   :  { %v1078_v56 = vmax.f32 %v970_v52, 0.0  ;;  %v2794_v52 = vld [vmem:[#allocation10 + $0xf0] ss:$8 sps:$4 sm:$0xff]   ;;  %1867 = vmatprep.subr.bf16.mxu1 %v2796_v50 }
 0x285   :  { %v1079_v58 = vmax.f32 %v972_v54, 0.0  ;;  %1868 = vmatpush1.bf16.msra.mxu1 %v2794_v52 }
 0x286   :  { %v1124_v59 = vpack.c.bf16 %v1078_v56, %v1076_v55 }
 0x287   :  { %v1125_v60 = vpack.c.bf16 %v1079_v58, %v1077_v57  ;;  %v975_v61 = vpop.f32.mrb[36].mxu1 }
 0x288   :  { %v976_v62 = vadd.f32 %v975_v61, %v3217_v29  ;;  %v977_v63 = vpop.f32.mrb[37].mxu1 }
 0x289   :  { %v978_v1 = vadd.f32 %v977_v63, %v3220_v30  ;;  %v979_v2 = vpop.f32.mrb[38].mxu1  ;;  %1456 = vmatprep.mubr.bf16.mxu0 %v1125_v60 }
 0x28a   :  { %v980_v3 = vadd.f32 %v979_v2, %v3217_v29  ;;  %v981_v4 = vpop.f32.mrb[39].mxu1  ;;  %1457 = vmatmul.mubr.bf16.gmra.mrb[96].mxu0 %v1124_v59  ;;  %v1080_v6 = vmax.f32 %v976_v62, 0.0 }
 0x28b   :  { %v982_v5 = vadd.f32 %v981_v4, %v3220_v30  ;;  %v1081_v9 = vmax.f32 %v978_v1, 0.0 }
 0x28c   :  { %v1082_v7 = vmax.f32 %v980_v3, 0.0 }
 0x28d   :  { %v1083_v0 = vmax.f32 %v982_v5, 0.0 }
 0x28e   :  { %v1126_v11 = vpack.c.bf16 %v1082_v7, %v1080_v6 }
 0x28f   :  { %v1127_v14 = vpack.c.bf16 %v1083_v0, %v1081_v9  ;;  %v985_v15 = vpop.f32.mrb[40].mxu1 }
 0x290   :  { %v986_v16 = vadd.f32 %v985_v15, %v3217_v29  ;;  %v987_v17 = vpop.f32.mrb[41].mxu1 }
 0x291   :  { %v988_v18 = vadd.f32 %v987_v17, %v3220_v30  ;;  %v989_v19 = vpop.f32.mrb[42].mxu1  ;;  %1466 = vmatprep.mubr.bf16.mxu0 %v1127_v14 }
 0x292   :  { %v990_v20 = vadd.f32 %v989_v19, %v3217_v29  ;;  %v991_v21 = vpop.f32.mrb[43].mxu1  ;;  %1467 = vmatmul.mubr.bf16.gmra.mrb[100].mxu0 %v1126_v11  ;;  %v1084_v23 = vmax.f32 %v986_v16, 0.0 }
 0x293   :  { %v992_v22 = vadd.f32 %v991_v21, %v3220_v30  ;;  %v1085_v25 = vmax.f32 %v988_v18, 0.0 }
 0x294   :  { %v1086_v24 = vmax.f32 %v990_v20, 0.0 }
 0x295   :  { %v1087_v26 = vmax.f32 %v992_v22, 0.0 }
 0x296   :  { %v1128_v27 = vpack.c.bf16 %v1086_v24, %v1084_v23 }
 0x297   :  { %v1129_v12 = vpack.c.bf16 %v1087_v26, %v1085_v25  ;;  %v995_v13 = vpop.f32.mrb[44].mxu1 }
 0x298   :  { %v996_v28 = vadd.f32 %v995_v13, %v3217_v29  ;;  %v997_v31 = vpop.f32.mrb[45].mxu1 }
 0x299   :  { %v998_v32 = vadd.f32 %v997_v31, %v3220_v30  ;;  %v999_v33 = vpop.f32.mrb[46].mxu1  ;;  %1476 = vmatprep.mubr.bf16.mxu0 %v1129_v12 }
 0x29a   :  { %v1000_v34 = vadd.f32 %v999_v33, %v3217_v29  ;;  %v1001_v35 = vpop.f32.mrb[47].mxu1  ;;  %1477 = vmatmul.mubr.bf16.gmra.mrb[104].mxu0 %v1128_v27  ;;  %v1088_v37 = vmax.f32 %v996_v28, 0.0 }
 0x29b   :  { %v1002_v36 = vadd.f32 %v1001_v35, %v3220_v30  ;;  %v1089_v39 = vmax.f32 %v998_v32, 0.0 }
 0x29c   :  { %v1090_v38 = vmax.f32 %v1000_v34, 0.0 }
 0x29d   :  { %v1091_v40 = vmax.f32 %v1002_v36, 0.0 }
 0x29e   :  { %v1130_v41 = vpack.c.bf16 %v1090_v38, %v1088_v37 }
 0x29f   :  { %v1131_v42 = vpack.c.bf16 %v1091_v40, %v1089_v39  ;;  %v1005_v43 = vpop.f32.mrb[48].mxu1 }
 0x2a0   :  { %v1006_v44 = vadd.f32 %v1005_v43, %v3217_v29  ;;  %v1007_v45 = vpop.f32.mrb[49].mxu1 }
 0x2a1   :  { %v1008_v46 = vadd.f32 %v1007_v45, %v3220_v30  ;;  %v1009_v47 = vpop.f32.mrb[50].mxu1  ;;  %1486 = vmatprep.mubr.bf16.mxu0 %v1131_v42 }
 0x2a2   :  { %v1010_v48 = vadd.f32 %v1009_v47, %v3217_v29  ;;  %v1011_v49 = vpop.f32.mrb[51].mxu1  ;;  %1487 = vmatmul.mubr.bf16.gmra.mrb[108].mxu0 %v1130_v41  ;;  %v1092_v53 = vmax.f32 %v1006_v44, 0.0  ;;  %v1172_v41 = vld [vmem:[%s3457_s6] sm:$0x3] }
 0x2a3   :  { %v1012_v51 = vadd.f32 %v1011_v49, %v3220_v30  ;;  %v1093_v55 = vmax.f32 %v1008_v46, 0.0  ;;  %v3290_v42 = vrot.slane %v1172_v41, %v3136_v8 }
 0x2a4   :  { %v1094_v54 = vmax.f32 %v1010_v48, 0.0 }
 0x2a5   :  { %v1095_v56 = vmax.f32 %v1012_v51, 0.0 }
 0x2a6   :  { %v1132_v57 = vpack.c.bf16 %v1094_v54, %v1092_v53 }
 0x2a7   :  { %v1133_v58 = vpack.c.bf16 %v1095_v56, %v1093_v55  ;;  %v1015_v59 = vpop.f32.mrb[52].mxu1 }
 0x2a8   :  { %v1016_v60 = vadd.f32 %v1015_v59, %v3217_v29  ;;  %v1017_v61 = vpop.f32.mrb[53].mxu1 }
 0x2a9   :  { %v1018_v62 = vadd.f32 %v1017_v61, %v3220_v30  ;;  %v1019_v63 = vpop.f32.mrb[54].mxu1  ;;  %1496 = vmatprep.mubr.bf16.mxu0 %v1133_v58 }
 0x2aa   :  { %v1020_v1 = vadd.f32 %v1019_v63, %v3217_v29  ;;  %v1021_v2 = vpop.f32.mrb[55].mxu1  ;;  %1497 = vmatmul.mubr.bf16.gmra.mrb[112].mxu0 %v1132_v57  ;;  %v1096_v4 = vmax.f32 %v1016_v60, 0.0 }
 0x2ab   :  { %v1022_v3 = vadd.f32 %v1021_v2, %v3220_v30  ;;  %v1097_v6 = vmax.f32 %v1018_v62, 0.0 }
 0x2ac   :  { %v1098_v5 = vmax.f32 %v1020_v1, 0.0 }
 0x2ad   :  { %v1099_v7 = vmax.f32 %v1022_v3, 0.0 }
 0x2ae   :  { %v1134_v9 = vpack.c.bf16 %v1098_v5, %v1096_v4 }
 0x2af   :  { %v1135_v0 = vpack.c.bf16 %v1099_v7, %v1097_v6  ;;  %v1025_v11 = vpop.f32.mrb[56].mxu1 }
 0x2b0   :  { %v1026_v14 = vadd.f32 %v1025_v11, %v3217_v29  ;;  %v1027_v15 = vpop.f32.mrb[57].mxu1 }
 0x2b1   :  { %v1028_v16 = vadd.f32 %v1027_v15, %v3220_v30  ;;  %v1029_v17 = vpop.f32.mrb[58].mxu1  ;;  %1506 = vmatprep.mubr.bf16.mxu0 %v1135_v0 }
 0x2b2   :  { %v1030_v18 = vadd.f32 %v1029_v17, %v3217_v29  ;;  %v1031_v19 = vpop.f32.mrb[59].mxu1  ;;  %1507 = vmatmul.mubr.bf16.gmra.mrb[116].mxu0 %v1134_v9  ;;  %v1100_v21 = vmax.f32 %v1026_v14, 0.0 }
 0x2b3   :  { %v1032_v20 = vadd.f32 %v1031_v19, %v3220_v30  ;;  %v1101_v23 = vmax.f32 %v1028_v16, 0.0 }
 0x2b4   :  { %v1102_v22 = vmax.f32 %v1030_v18, 0.0 }
 0x2b5   :  { %v1103_v24 = vmax.f32 %v1032_v20, 0.0 }
 0x2b6   :  { %v1136_v25 = vpack.c.bf16 %v1102_v22, %v1100_v21 }
 0x2b7   :  { %v1137_v26 = vpack.c.bf16 %v1103_v24, %v1101_v23  ;;  %v1035_v27 = vpop.f32.mrb[60].mxu1 }
 0x2b8   :  { %v1036_v12 = vadd.f32 %v1035_v27, %v3217_v29  ;;  %v1037_v13 = vpop.f32.mrb[61].mxu1 }
 0x2b9   :  { %v1038_v28 = vadd.f32 %v1037_v13, %v3220_v30  ;;  %v1039_v31 = vpop.f32.mrb[62].mxu1  ;;  %1516 = vmatprep.mubr.bf16.mxu0 %v1137_v26 }
 0x2ba   :  { %v1040_v32 = vadd.f32 %v1039_v31, %v3217_v29  ;;  %v1041_v33 = vpop.f32.mrb[63].mxu1  ;;  %1517 = vmatmul.mubr.bf16.gmra.mrb[120].mxu0 %v1136_v25  ;;  %v1104_v35 = vmax.f32 %v1036_v12, 0.0  ;;  %v3293_v29 = vrot.slane %v1172_v41, %v3141_v10 }
 0x2bb   :  { %v1042_v34 = vadd.f32 %v1041_v33, %v3220_v30  ;;  %v1105_v37 = vmax.f32 %v1038_v28, 0.0 }
 0x2bc   :  { %v1106_v36 = vmax.f32 %v1040_v32, 0.0 }
 0x2bd   :  { %v1107_v38 = vmax.f32 %v1042_v34, 0.0 }
 0x2be   :  { %v1138_v39 = vpack.c.bf16 %v1106_v36, %v1104_v35 }
 0x2bf   :  { %v1139_v40 = vpack.c.bf16 %v1107_v38, %v1105_v37 }
 0x2c1   :  { %1526 = vmatprep.mubr.bf16.mxu0 %v1139_v40 }
 0x2c2   :  { %1527 = vmatmul.mubr.bf16.gmra.mrb[124].mxu0 %v1138_v39 }
 0x31d   :  { %v1378_v43 = vpop.f32.mrb[64].mxu0 }
 0x31e   :  { %v1379_v30 = vadd.f32 %v1378_v43, %v3290_v42  ;;  %v1380_v44 = vpop.f32.mrb[65].mxu0 }
 0x31f   :  { %v1381_v45 = vadd.f32 %v1380_v44, %v3293_v29  ;;  %v1382_v46 = vpop.f32.mrb[66].mxu0 }
 0x320   :  { %v1383_v47 = vadd.f32 %v1382_v46, %v3290_v42  ;;  %v1384_v48 = vpop.f32.mrb[67].mxu0  ;;  %v1537_v50 = vmax.f32 %v1379_v30, 0.0 }
 0x321   :  { %v1385_v49 = vadd.f32 %v1384_v48, %v3293_v29  ;;  %v1538_v52 = vmax.f32 %v1381_v45, 0.0 }
 0x322   :  { %v1539_v51 = vmax.f32 %v1383_v47, 0.0 }
 0x323   :  { %v1540_v53 = vmax.f32 %v1385_v49, 0.0 }
 0x324   :  { %v1601_v54 = vpack.c.bf16 %v1539_v51, %v1537_v50 }
 0x325   :  { %v1602_v55 = vpack.c.bf16 %v1540_v53, %v1538_v52  ;;  %v1388_v56 = vpop.f32.mrb[68].mxu0 }
 0x326   :  { %v1389_v57 = vadd.f32 %v1388_v56, %v3290_v42  ;;  %v1390_v58 = vpop.f32.mrb[69].mxu0 }
 0x327   :  { %v1391_v59 = vadd.f32 %v1390_v58, %v3293_v29  ;;  %v1392_v60 = vpop.f32.mrb[70].mxu0  ;;  %1869 = vmatprep.mubr.bf16.mxu1 %v1602_v55 }
 0x328   :  { %v1393_v61 = vadd.f32 %v1392_v60, %v3290_v42  ;;  %v1394_v62 = vpop.f32.mrb[71].mxu0  ;;  %1870 = vmatmul.mubr.bf16.vlgmr.msra.gmra.mrb[64].mxu1 %v1601_v54  ;;  %v1541_v1 = vmax.f32 %v1389_v57, 0.0 }
 0x329   :  { %v1395_v63 = vadd.f32 %v1394_v62, %v3293_v29  ;;  %v1542_v3 = vmax.f32 %v1391_v59, 0.0 }
 0x32a   :  { %v1543_v2 = vmax.f32 %v1393_v61, 0.0 }
 0x32b   :  { %v1544_v4 = vmax.f32 %v1395_v63, 0.0 }
 0x32c   :  { %v1603_v5 = vpack.c.bf16 %v1543_v2, %v1541_v1 }
 0x32d   :  { %v1604_v6 = vpack.c.bf16 %v1544_v4, %v1542_v3  ;;  %v1398_v7 = vpop.f32.mrb[72].mxu0 }
 0x32e   :  { %v1399_v9 = vadd.f32 %v1398_v7, %v3290_v42  ;;  %v1400_v0 = vpop.f32.mrb[73].mxu0 }
 0x32f   :  { %v1401_v11 = vadd.f32 %v1400_v0, %v3293_v29  ;;  %v1402_v14 = vpop.f32.mrb[74].mxu0  ;;  %1879 = vmatprep.mubr.bf16.mxu1 %v1604_v6 }
 0x330   :  { %v1403_v15 = vadd.f32 %v1402_v14, %v3290_v42  ;;  %v1404_v16 = vpop.f32.mrb[75].mxu0  ;;  %1880 = vmatmul.mubr.bf16.gmra.mrb[68].mxu1 %v1603_v5  ;;  %v1545_v18 = vmax.f32 %v1399_v9, 0.0 }
 0x331   :  { %v1405_v17 = vadd.f32 %v1404_v16, %v3293_v29  ;;  %v1546_v20 = vmax.f32 %v1401_v11, 0.0 }
 0x332   :  { %v1547_v19 = vmax.f32 %v1403_v15, 0.0 }
 0x333   :  { %v1548_v21 = vmax.f32 %v1405_v17, 0.0 }
 0x334   :  { %v1605_v22 = vpack.c.bf16 %v1547_v19, %v1545_v18 }
 0x335   :  { %v1606_v23 = vpack.c.bf16 %v1548_v21, %v1546_v20  ;;  %v1408_v24 = vpop.f32.mrb[76].mxu0 }
 0x336   :  { %v1409_v25 = vadd.f32 %v1408_v24, %v3290_v42  ;;  %v1410_v26 = vpop.f32.mrb[77].mxu0 }
 0x337   :  { %v1411_v27 = vadd.f32 %v1410_v26, %v3293_v29  ;;  %v1412_v12 = vpop.f32.mrb[78].mxu0  ;;  %1889 = vmatprep.mubr.bf16.mxu1 %v1606_v23 }
 0x338   :  { %v1413_v13 = vadd.f32 %v1412_v12, %v3290_v42  ;;  %v1414_v28 = vpop.f32.mrb[79].mxu0  ;;  %1890 = vmatmul.mubr.bf16.gmra.mrb[72].mxu1 %v1605_v22  ;;  %v1549_v32 = vmax.f32 %v1409_v25, 0.0 }
 0x339   :  { %v1415_v31 = vadd.f32 %v1414_v28, %v3293_v29  ;;  %v1550_v34 = vmax.f32 %v1411_v27, 0.0 }
 0x33a   :  { %v1551_v33 = vmax.f32 %v1413_v13, 0.0 }
 0x33b   :  { %v1552_v35 = vmax.f32 %v1415_v31, 0.0 }
 0x33c   :  { %v1607_v36 = vpack.c.bf16 %v1551_v33, %v1549_v32 }
 0x33d   :  { %v1608_v37 = vpack.c.bf16 %v1552_v35, %v1550_v34  ;;  %v1418_v38 = vpop.f32.mrb[80].mxu0 }
 0x33e   :  { %v1419_v39 = vadd.f32 %v1418_v38, %v3290_v42  ;;  %v1420_v40 = vpop.f32.mrb[81].mxu0 }
 0x33f   :  { %v1421_v41 = vadd.f32 %v1420_v40, %v3293_v29  ;;  %v1422_v43 = vpop.f32.mrb[82].mxu0  ;;  %1899 = vmatprep.mubr.bf16.mxu1 %v1608_v37 }
 0x340   :  { %v1423_v30 = vadd.f32 %v1422_v43, %v3290_v42  ;;  %v1424_v44 = vpop.f32.mrb[83].mxu0  ;;  %1900 = vmatmul.mubr.bf16.gmra.mrb[76].mxu1 %v1607_v36  ;;  %v1553_v46 = vmax.f32 %v1419_v39, 0.0 }
 0x341   :  { %v1425_v45 = vadd.f32 %v1424_v44, %v3293_v29  ;;  %v1554_v48 = vmax.f32 %v1421_v41, 0.0 }
 0x342   :  { %v1555_v47 = vmax.f32 %v1423_v30, 0.0 }
 0x343   :  { %v1556_v49 = vmax.f32 %v1425_v45, 0.0 }
 0x344   :  { %v1609_v50 = vpack.c.bf16 %v1555_v47, %v1553_v46 }
 0x345   :  { %v1610_v51 = vpack.c.bf16 %v1556_v49, %v1554_v48  ;;  %v1428_v52 = vpop.f32.mrb[84].mxu0 }
 0x346   :  { %v1429_v53 = vadd.f32 %v1428_v52, %v3290_v42  ;;  %v1430_v54 = vpop.f32.mrb[85].mxu0 }
 0x347   :  { %v1431_v55 = vadd.f32 %v1430_v54, %v3293_v29  ;;  %v1432_v56 = vpop.f32.mrb[86].mxu0  ;;  %1909 = vmatprep.mubr.bf16.mxu1 %v1610_v51 }
 0x348   :  { %v1433_v57 = vadd.f32 %v1432_v56, %v3290_v42  ;;  %v1434_v58 = vpop.f32.mrb[87].mxu0  ;;  %1910 = vmatmul.mubr.bf16.gmra.mrb[80].mxu1 %v1609_v50  ;;  %v1557_v60 = vmax.f32 %v1429_v53, 0.0 }
 0x349   :  { %v1435_v59 = vadd.f32 %v1434_v58, %v3293_v29  ;;  %v1558_v62 = vmax.f32 %v1431_v55, 0.0 }
 0x34a   :  { %v1559_v61 = vmax.f32 %v1433_v57, 0.0 }
 0x34b   :  { %v1560_v63 = vmax.f32 %v1435_v59, 0.0 }
 0x34c   :  { %v1611_v1 = vpack.c.bf16 %v1559_v61, %v1557_v60 }
 0x34d   :  { %v1612_v2 = vpack.c.bf16 %v1560_v63, %v1558_v62  ;;  %v1438_v3 = vpop.f32.mrb[88].mxu0 }
 0x34e   :  { %v1439_v4 = vadd.f32 %v1438_v3, %v3290_v42  ;;  %v1440_v5 = vpop.f32.mrb[89].mxu0 }
 0x34f   :  { %v1441_v6 = vadd.f32 %v1440_v5, %v3293_v29  ;;  %v1442_v7 = vpop.f32.mrb[90].mxu0  ;;  %1919 = vmatprep.mubr.bf16.mxu1 %v1612_v2 }
 0x350   :  { %v1443_v9 = vadd.f32 %v1442_v7, %v3290_v42  ;;  %v1444_v0 = vpop.f32.mrb[91].mxu0  ;;  %1920 = vmatmul.mubr.bf16.gmra.mrb[84].mxu1 %v1611_v1  ;;  %v1561_v14 = vmax.f32 %v1439_v4, 0.0 }
 0x351   :  { %v1445_v11 = vadd.f32 %v1444_v0, %v3293_v29  ;;  %v1562_v16 = vmax.f32 %v1441_v6, 0.0 }
 0x352   :  { %v1563_v15 = vmax.f32 %v1443_v9, 0.0 }
 0x353   :  { %v1564_v17 = vmax.f32 %v1445_v11, 0.0 }
 0x354   :  { %v1613_v18 = vpack.c.bf16 %v1563_v15, %v1561_v14 }
 0x355   :  { %v1614_v19 = vpack.c.bf16 %v1564_v17, %v1562_v16  ;;  %v1448_v20 = vpop.f32.mrb[92].mxu0 }
 0x356   :  { %v1449_v21 = vadd.f32 %v1448_v20, %v3290_v42  ;;  %v1450_v22 = vpop.f32.mrb[93].mxu0 }
 0x357   :  { %v1451_v23 = vadd.f32 %v1450_v22, %v3293_v29  ;;  %v1452_v24 = vpop.f32.mrb[94].mxu0  ;;  %1929 = vmatprep.mubr.bf16.mxu1 %v1614_v19 }
 0x358   :  { %v1453_v25 = vadd.f32 %v1452_v24, %v3290_v42  ;;  %v1454_v26 = vpop.f32.mrb[95].mxu0  ;;  %1930 = vmatmul.mubr.bf16.gmra.mrb[88].mxu1 %v1613_v18  ;;  %v1565_v12 = vmax.f32 %v1449_v21, 0.0 }
 0x359   :  { %v1455_v27 = vadd.f32 %v1454_v26, %v3293_v29  ;;  %v1566_v28 = vmax.f32 %v1451_v23, 0.0 }
 0x35a   :  { %v1567_v13 = vmax.f32 %v1453_v25, 0.0 }
 0x35b   :  { %v1568_v31 = vmax.f32 %v1455_v27, 0.0 }
 0x35c   :  { %v1615_v32 = vpack.c.bf16 %v1567_v13, %v1565_v12 }
 0x35d   :  { %v1616_v33 = vpack.c.bf16 %v1568_v31, %v1566_v28  ;;  %v1458_v34 = vpop.f32.mrb[96].mxu0 }
 0x35e   :  { %v1459_v35 = vadd.f32 %v1458_v34, %v3290_v42  ;;  %v1460_v36 = vpop.f32.mrb[97].mxu0 }
 0x35f   :  { %v1461_v37 = vadd.f32 %v1460_v36, %v3293_v29  ;;  %v1462_v38 = vpop.f32.mrb[98].mxu0  ;;  %1939 = vmatprep.mubr.bf16.mxu1 %v1616_v33 }
 0x360   :  { %v1463_v39 = vadd.f32 %v1462_v38, %v3290_v42  ;;  %v1464_v40 = vpop.f32.mrb[99].mxu0  ;;  %1940 = vmatmul.mubr.bf16.gmra.mrb[92].mxu1 %v1615_v32  ;;  %v1569_v43 = vmax.f32 %v1459_v35, 0.0 }
 0x361   :  { %v1465_v41 = vadd.f32 %v1464_v40, %v3293_v29  ;;  %v1570_v44 = vmax.f32 %v1461_v37, 0.0 }
 0x362   :  { %v1571_v30 = vmax.f32 %v1463_v39, 0.0 }
 0x363   :  { %v1572_v45 = vmax.f32 %v1465_v41, 0.0 }
 0x364   :  { %v1617_v46 = vpack.c.bf16 %v1571_v30, %v1569_v43 }
 0x365   :  { %v1618_v47 = vpack.c.bf16 %v1572_v45, %v1570_v44  ;;  %v1468_v48 = vpop.f32.mrb[100].mxu0 }
 0x366   :  { %v1469_v49 = vadd.f32 %v1468_v48, %v3290_v42  ;;  %v1470_v50 = vpop.f32.mrb[101].mxu0 }
 0x367   :  { %v1471_v51 = vadd.f32 %v1470_v50, %v3293_v29  ;;  %v1472_v52 = vpop.f32.mrb[102].mxu0  ;;  %1949 = vmatprep.mubr.bf16.mxu1 %v1618_v47 }
 0x368   :  { %v1473_v53 = vadd.f32 %v1472_v52, %v3290_v42  ;;  %v1474_v54 = vpop.f32.mrb[103].mxu0  ;;  %1950 = vmatmul.mubr.bf16.gmra.mrb[96].mxu1 %v1617_v46  ;;  %v1573_v56 = vmax.f32 %v1469_v49, 0.0 }
 0x369   :  { %v1475_v55 = vadd.f32 %v1474_v54, %v3293_v29  ;;  %v1574_v58 = vmax.f32 %v1471_v51, 0.0 }
 0x36a   :  { %v1575_v57 = vmax.f32 %v1473_v53, 0.0 }
 0x36b   :  { %v1576_v59 = vmax.f32 %v1475_v55, 0.0 }
 0x36c   :  { %v1619_v60 = vpack.c.bf16 %v1575_v57, %v1573_v56 }
 0x36d   :  { %v1620_v61 = vpack.c.bf16 %v1576_v59, %v1574_v58  ;;  %v1478_v62 = vpop.f32.mrb[104].mxu0 }
 0x36e   :  { %v1479_v63 = vadd.f32 %v1478_v62, %v3290_v42  ;;  %v1480_v1 = vpop.f32.mrb[105].mxu0 }
 0x36f   :  { %v1481_v2 = vadd.f32 %v1480_v1, %v3293_v29  ;;  %v1482_v3 = vpop.f32.mrb[106].mxu0  ;;  %1959 = vmatprep.mubr.bf16.mxu1 %v1620_v61 }
 0x370   :  { %v1483_v4 = vadd.f32 %v1482_v3, %v3290_v42  ;;  %v1484_v5 = vpop.f32.mrb[107].mxu0  ;;  %1960 = vmatmul.mubr.bf16.gmra.mrb[100].mxu1 %v1619_v60  ;;  %v1577_v7 = vmax.f32 %v1479_v63, 0.0 }
 0x371   :  { %v1485_v6 = vadd.f32 %v1484_v5, %v3293_v29  ;;  %v1578_v0 = vmax.f32 %v1481_v2, 0.0 }
 0x372   :  { %v1579_v9 = vmax.f32 %v1483_v4, 0.0 }
 0x373   :  { %v1580_v11 = vmax.f32 %v1485_v6, 0.0 }
 0x374   :  { %v1621_v14 = vpack.c.bf16 %v1579_v9, %v1577_v7 }
 0x375   :  { %v1622_v15 = vpack.c.bf16 %v1580_v11, %v1578_v0  ;;  %v1488_v16 = vpop.f32.mrb[108].mxu0 }
 0x376   :  { %v1489_v17 = vadd.f32 %v1488_v16, %v3290_v42  ;;  %v1490_v18 = vpop.f32.mrb[109].mxu0 }
 0x377   :  { %v1491_v19 = vadd.f32 %v1490_v18, %v3293_v29  ;;  %v1492_v20 = vpop.f32.mrb[110].mxu0  ;;  %1969 = vmatprep.mubr.bf16.mxu1 %v1622_v15  ;;  %v2255_v18 = vld [vmem:[#allocation11 + $0x88] sm:$0xff] }
 0x378   :  { %v1493_v21 = vadd.f32 %v1492_v20, %v3290_v42  ;;  %v1494_v22 = vpop.f32.mrb[111].mxu0  ;;  %1970 = vmatmul.mubr.bf16.gmra.mrb[104].mxu1 %v1621_v14  ;;  %v1581_v24 = vmax.f32 %v1489_v17, 0.0  ;;  %v2254_v17 = vld [vmem:[#allocation11 + $0x80] sm:$0xff] }
 0x379   :  { %v1495_v23 = vadd.f32 %v1494_v22, %v3293_v29  ;;  %v1582_v26 = vmax.f32 %v1491_v19, 0.0  ;;  %v2238_v19 = vld [vmem:[#allocation11] sm:$0xff]  ;;  %v2569_v22 = vpack.c.bf16 %v2255_v18, %v2254_v17 }
 0x37a   :  { %v1583_v25 = vmax.f32 %v1493_v21, 0.0 }
 0x37b   :  { %v1584_v27 = vmax.f32 %v1495_v23, 0.0  ;;  %v2239_v23 = vld [vmem:[#allocation11 + $0x8] sm:$0xff]  ;;  %2570 = vmatprep.subr.bf16.mxu0 %v2569_v22 }
 0x37c   :  { %v1623_v12 = vpack.c.bf16 %v1583_v25, %v1581_v24  ;;  %v2571_v25 = vpack.c.bf16 %v2239_v23, %v2238_v19 }
 0x37d   :  { %v1624_v13 = vpack.c.bf16 %v1584_v27, %v1582_v26  ;;  %v1498_v28 = vpop.f32.mrb[112].mxu0 }
 0x37e   :  { %v1499_v31 = vadd.f32 %v1498_v28, %v3290_v42  ;;  %v1500_v32 = vpop.f32.mrb[113].mxu0  ;;  %2572 = vmatpush3.bf16.msra.mxu0 %v2571_v25  ;;  %v2269_v25 = vld [vmem:[#allocation11 + $0xf8] sm:$0xff] }
 0x37f   :  { %v1501_v33 = vadd.f32 %v1500_v32, %v3293_v29  ;;  %v1502_v34 = vpop.f32.mrb[114].mxu0  ;;  %1979 = vmatprep.mubr.bf16.mxu1 %v1624_v13  ;;  %v2256_v32 = vld [vmem:[#allocation11 + $0x90] sm:$0xff] }
 0x380   :  { %v1503_v35 = vadd.f32 %v1502_v34, %v3290_v42  ;;  %v1504_v36 = vpop.f32.mrb[115].mxu0  ;;  %1980 = vmatmul.mubr.bf16.gmra.mrb[108].mxu1 %v1623_v12  ;;  %v1585_v38 = vmax.f32 %v1499_v31, 0.0 }
 0x381   :  { %v1505_v37 = vadd.f32 %v1504_v36, %v3293_v29  ;;  %v1586_v40 = vmax.f32 %v1501_v33, 0.0  ;;  %v2257_v33 = vld [vmem:[#allocation11 + $0x98] sm:$0xff] }
 0x382   :  { %v1587_v39 = vmax.f32 %v1503_v35, 0.0  ;;  %v2573_v34 = vpack.c.bf16 %v2257_v33, %v2256_v32  ;;  %v2241_v35 = vld [vmem:[#allocation11 + $0x18] sm:$0xff] }
 0x383   :  { %v1588_v41 = vmax.f32 %v1505_v37, 0.0  ;;  %v2259_v37 = vld [vmem:[#allocation11 + $0xa8] sm:$0xff] }
 0x384   :  { %v1625_v43 = vpack.c.bf16 %v1587_v39, %v1585_v38  ;;  %2574 = vmatprep.subr.bf16.mxu0 %v2573_v34  ;;  %v2242_v38 = vld [vmem:[#allocation11 + $0x20] sm:$0xff] }
 0x385   :  { %v1626_v30 = vpack.c.bf16 %v1588_v41, %v1586_v40  ;;  %v1508_v44 = vpop.f32.mrb[116].mxu0  ;;  %v2243_v40 = vld [vmem:[#allocation11 + $0x28] sm:$0xff] }
 0x386   :  { %v1509_v45 = vadd.f32 %v1508_v44, %v3290_v42  ;;  %v1510_v46 = vpop.f32.mrb[117].mxu0  ;;  %v2579_v41 = vpack.c.bf16 %v2243_v40, %v2242_v38  ;;  %v2244_v44 = vld [vmem:[#allocation11 + $0x30] sm:$0xff] }
 0x387   :  { %v1511_v47 = vadd.f32 %v1510_v46, %v3293_v29  ;;  %v1512_v48 = vpop.f32.mrb[118].mxu0  ;;  %1989 = vmatprep.mubr.bf16.mxu1 %v1626_v30  ;;  %v2261_v30 = vld [vmem:[#allocation11 + $0xb8] sm:$0xff] }
 0x388   :  { %v1513_v49 = vadd.f32 %v1512_v48, %v3290_v42  ;;  %v1514_v50 = vpop.f32.mrb[119].mxu0  ;;  %1990 = vmatmul.mubr.bf16.gmra.mrb[112].mxu1 %v1625_v43  ;;  %v1589_v52 = vmax.f32 %v1509_v45, 0.0  ;;  %v2260_v43 = vld [vmem:[#allocation11 + $0xb0] sm:$0xff]  ;;  %v2245_v46 = vld [vmem:[#allocation11 + $0x38] sm:$0xff]  ;;  %v2262_v48 = vld [vmem:[#allocation11 + $0xc0] sm:$0xff] }
 0x389   :  { %v1515_v51 = vadd.f32 %v1514_v50, %v3293_v29  ;;  %v1590_v54 = vmax.f32 %v1511_v47, 0.0  ;;  %v2581_v45 = vpack.c.bf16 %v2261_v30, %v2260_v43  ;;  %v2583_v47 = vpack.c.bf16 %v2245_v46, %v2244_v44  ;;  %v2246_v50 = vld [vmem:[#allocation11 + $0x40] sm:$0xff] }
 0x38a   :  { %v1591_v53 = vmax.f32 %v1513_v49, 0.0  ;;  %v2263_v49 = vld [vmem:[#allocation11 + $0xc8] sm:$0xff] }
 0x38b   :  { %v1592_v55 = vmax.f32 %v1515_v51, 0.0  ;;  %v2585_v51 = vpack.c.bf16 %v2263_v49, %v2262_v48 }
 0x38c   :  { %v1627_v56 = vpack.c.bf16 %v1591_v53, %v1589_v52  ;;  %v2247_v52 = vld [vmem:[#allocation11 + $0x48] sm:$0xff] }
 0x38d   :  { %v1628_v57 = vpack.c.bf16 %v1592_v55, %v1590_v54  ;;  %v1518_v58 = vpop.f32.mrb[120].mxu0  ;;  %v2587_v53 = vpack.c.bf16 %v2247_v52, %v2246_v50  ;;  %v2264_v54 = vld [vmem:[#allocation11 + $0xd0] sm:$0xff]  ;;  %v2265_v55 = vld [vmem:[#allocation11 + $0xd8] sm:$0xff] }
 0x38e   :  { %v1519_v59 = vadd.f32 %v1518_v58, %v3290_v42  ;;  %v1520_v60 = vpop.f32.mrb[121].mxu0  ;;  %v2249_v58 = vld [vmem:[#allocation11 + $0x58] sm:$0xff] }
 0x38f   :  { %v1521_v61 = vadd.f32 %v1520_v60, %v3293_v29  ;;  %v1522_v62 = vpop.f32.mrb[122].mxu0  ;;  %1999 = vmatprep.mubr.bf16.mxu1 %v1628_v57  ;;  %v2589_v57 = vpack.c.bf16 %v2265_v55, %v2264_v54  ;;  %v1665_v60 = vld [vmem:[%s3459_s8] sm:$0x3] }
 0x390   :  { %v1523_v63 = vadd.f32 %v1522_v62, %v3290_v42  ;;  %v1524_v1 = vpop.f32.mrb[123].mxu0  ;;  %2000 = vmatmul.mubr.bf16.gmra.mrb[116].mxu1 %v1627_v56  ;;  %v1593_v3 = vmax.f32 %v1519_v59, 0.0  ;;  %v2248_v56 = vld [vmem:[#allocation11 + $0x50] sm:$0xff]  ;;  %v2267_v62 = vld [vmem:[#allocation11 + $0xe8] sm:$0xff] }
 0x391   :  { %v1525_v2 = vadd.f32 %v1524_v1, %v3293_v29  ;;  %v1594_v5 = vmax.f32 %v1521_v61, 0.0  ;;  %v2591_v59 = vpack.c.bf16 %v2249_v58, %v2248_v56  ;;  %v2266_v61 = vld [vmem:[#allocation11 + $0xe0] sm:$0xff] }
 0x392   :  { %v1595_v4 = vmax.f32 %v1523_v63, 0.0  ;;  %v2250_v63 = vld [vmem:[#allocation11 + $0x60] sm:$0xff]  ;;  %v2593_v1 = vpack.c.bf16 %v2267_v62, %v2266_v61 }
 0x393   :  { %v1596_v6 = vmax.f32 %v1525_v2, 0.0  ;;  %v2251_v2 = vld [vmem:[#allocation11 + $0x68] sm:$0xff] }
 0x394   :  { %v1629_v7 = vpack.c.bf16 %v1595_v4, %v1593_v3  ;;  %v3363_v3 = vrot.slane %v1665_v60, %v3136_v8  ;;  %v2595_v4 = vpack.c.bf16 %v2251_v2, %v2250_v63 }
 0x395   :  { %v1630_v9 = vpack.c.bf16 %v1596_v6, %v1594_v5  ;;  %v1528_v0 = vpop.f32.mrb[124].mxu0  ;;  %v3366_v5 = vrot.slane %v1665_v60, %v3141_v10 }
 0x396   :  { %v1529_v11 = vadd.f32 %v1528_v0, %v3290_v42  ;;  %v1530_v14 = vpop.f32.mrb[125].mxu0 }
 0x397   :  { %v1531_v15 = vadd.f32 %v1530_v14, %v3293_v29  ;;  %v1532_v16 = vpop.f32.mrb[126].mxu0  ;;  %2009 = vmatprep.mubr.bf16.mxu1 %v1630_v9 }
 0x398   :  { %v1533_v20 = vadd.f32 %v1532_v16, %v3290_v42  ;;  %v1534_v21 = vpop.f32.mrb[127].mxu0  ;;  %2010 = vmatmul.mubr.bf16.gmra.mrb[120].mxu1 %v1629_v7  ;;  %v1597_v26 = vmax.f32 %v1529_v11, 0.0  ;;  %v2240_v42 = vld [vmem:[#allocation11 + $0x10] sm:$0xff] }
 0x399   :  { %v1535_v24 = vadd.f32 %v1534_v21, %v3293_v29  ;;  %v1598_v12 = vmax.f32 %v1531_v15, 0.0  ;;  %v2575_v36 = vpack.c.bf16 %v2241_v35, %v2240_v42  ;;  %v2258_v29 = vld [vmem:[#allocation11 + $0xa0] sm:$0xff] }
 0x39a   :  { %v1599_v27 = vmax.f32 %v1533_v20, 0.0  ;;  %v2577_v39 = vpack.c.bf16 %v2259_v37, %v2258_v29 }
 0x39b   :  { %v1600_v13 = vmax.f32 %v1535_v24, 0.0  ;;  %2576 = vmatpush3.bf16.msra.mxu0 %v2575_v36  ;;  %v2268_v24 = vld [vmem:[#allocation11 + $0xf0] sm:$0xff] }
 0x39c   :  { %v1631_v28 = vpack.c.bf16 %v1599_v27, %v1597_v26  ;;  %2578 = vmatprep.subr.bf16.mxu0 %v2577_v39 }
 0x39d   :  { %v1632_v31 = vpack.c.bf16 %v1600_v13, %v1598_v12  ;;  %v2597_v12 = vpack.c.bf16 %v2269_v25, %v2268_v24  ;;  %v2252_v13 = vld [vmem:[#allocation11 + $0x70] sm:$0xff] }
 0x39f   :  { %2019 = vmatprep.mubr.bf16.mxu1 %v1632_v31  ;;  %2580 = vmatpush3.bf16.msra.mxu0 %v2579_v41 }
 0x3a0   :  { %2020 = vmatmul.mubr.bf16.gmra.mrb[124].mxu1 %v1631_v28  ;;  %2582 = vmatprep.subr.bf16.mxu0 %v2581_v45  ;;  %v2253_v28 = vld [vmem:[#allocation11 + $0x78] sm:$0xff] }
 0x3a1   :  { %v2599_v42 = vpack.c.bf16 %v2253_v28, %v2252_v13 }
 0x3a3   :  { %2584 = vmatpush3.bf16.msra.mxu0 %v2583_v47 }
 0x3a4   :  { %2586 = vmatprep.subr.bf16.mxu0 %v2585_v51 }
 0x3a7   :  { %2588 = vmatpush3.bf16.msra.mxu0 %v2587_v53 }
 0x3a8   :  { %2590 = vmatprep.subr.bf16.mxu0 %v2589_v57 }
 0x3ab   :  { %2592 = vmatpush3.bf16.msra.mxu0 %v2591_v59 }
 0x3ac   :  { %2594 = vmatprep.subr.bf16.mxu0 %v2593_v1 }
 0x3af   :  { %2596 = vmatpush3.bf16.msra.mxu0 %v2595_v4 }
 0x3b0   :  { %2598 = vmatprep.subr.bf16.mxu0 %v2597_v12 }
 0x3b3   :  { %2600 = vmatpush3.bf16.msra.mxu0 %v2599_v42 }
 0x3fb   :  { %v1871_v6 = vpop.f32.mrb[64].mxu1 }
 0x3fc   :  { %v1872_v7 = vadd.f32 %v1871_v6, %v3363_v3  ;;  %v1873_v9 = vpop.f32.mrb[65].mxu1 }
 0x3fd   :  { %v1874_v0 = vadd.f32 %v1873_v9, %v3366_v5  ;;  %v1875_v11 = vpop.f32.mrb[66].mxu1 }
 0x3fe   :  { %v1876_v14 = vadd.f32 %v1875_v11, %v3363_v3  ;;  %v1877_v15 = vpop.f32.mrb[67].mxu1  ;;  %v2030_v8 = vmax.f32 %v1872_v7, 0.0 }
 0x3ff   :  { %v1878_v16 = vadd.f32 %v1877_v15, %v3366_v5  ;;  %v2031_v18 = vmax.f32 %v1874_v0, 0.0 }
 0x400   :  { %v2032_v17 = vmax.f32 %v1876_v14, 0.0 }
 0x401   :  { %v2033_v19 = vmax.f32 %v1878_v16, 0.0 }
 0x402   :  { %v2094_v10 = vadd.f32 %v2032_v17, %v2030_v8 }
 0x403   :  { %v2103_v20 = vadd.f32 %v2033_v19, %v2031_v18  ;;  %v1881_v21 = vpop.f32.mrb[68].mxu1 }
 0x404   :  { %v1882_v22 = vadd.f32 %v1881_v21, %v3363_v3  ;;  %v1883_v23 = vpop.f32.mrb[69].mxu1 }
 0x405   :  { %v1884_v26 = vadd.f32 %v1883_v23, %v3366_v5  ;;  %v1885_v27 = vpop.f32.mrb[70].mxu1 }
 0x406   :  { %v2034_v31 = vmax.f32 %v1882_v22, 0.0  ;;  %v1886_v32 = vadd.f32 %v1885_v27, %v3363_v3  ;;  %v1887_v33 = vpop.f32.mrb[71].mxu1 }
 0x407   :  { %v2035_v34 = vmax.f32 %v1884_v26, 0.0  ;;  %v1888_v35 = vadd.f32 %v1887_v33, %v3366_v5 }
 0x408   :  { %v2095_v36 = vadd.f32 %v2094_v10, %v2034_v31  ;;  %v2036_v29 = vmax.f32 %v1886_v32, 0.0 }
 0x409   :  { %v2104_v37 = vadd.f32 %v2103_v20, %v2035_v34  ;;  %v2037_v38 = vmax.f32 %v1888_v35, 0.0 }
 0x40a   :  { %v2096_v39 = vadd.f32 %v2095_v36, %v2036_v29 }
 0x40b   :  { %v2105_v40 = vadd.f32 %v2104_v37, %v2037_v38  ;;  %v1891_v41 = vpop.f32.mrb[72].mxu1 }
 0x40c   :  { %v1892_v43 = vadd.f32 %v1891_v41, %v3363_v3  ;;  %v1893_v30 = vpop.f32.mrb[73].mxu1  ;;  %v2097_v53 = vrot.slane %v2096_v39, 4 }
 0x40d   :  { %v1894_v44 = vadd.f32 %v1893_v30, %v3366_v5  ;;  %v1895_v45 = vpop.f32.mrb[74].mxu1  ;;  %v2106_v55 = vrot.slane %v2105_v40, 4 }
 0x40e   :  { %v1896_v46 = vadd.f32 %v1895_v45, %v3363_v3  ;;  %v1897_v47 = vpop.f32.mrb[75].mxu1  ;;  %v2038_v49 = vmax.f32 %v1892_v43, 0.0  ;;  %v2098_v62 = vadd.f32 %v2097_v53, %v2096_v39 }
 0x40f   :  { %v1898_v48 = vadd.f32 %v1897_v47, %v3366_v5  ;;  %v2039_v51 = vmax.f32 %v1894_v44, 0.0  ;;  %v2107_v4 = vadd.f32 %v2106_v55, %v2105_v40 }
 0x410   :  { %v2040_v50 = vmax.f32 %v1896_v46, 0.0  ;;  %v2099_v15 = vrot.slane %v2098_v62, 2 }
 0x411   :  { %v2041_v52 = vmax.f32 %v1898_v48, 0.0  ;;  %v2108_v8 = vrot.slane %v2107_v4, 2 }
 0x412   :  { %v2112_v54 = vadd.f32 %v2040_v50, %v2038_v49  ;;  %v2100_v24 = vadd.f32 %v2099_v15, %v2098_v62 }
 0x413   :  { %v2121_v56 = vadd.f32 %v2041_v52, %v2039_v51  ;;  %v1901_v57 = vpop.f32.mrb[76].mxu1  ;;  %v2109_v12 = vadd.f32 %v2108_v8, %v2107_v4 }
 0x414   :  { %v1902_v58 = vadd.f32 %v1901_v57, %v3363_v3  ;;  %v1903_v59 = vpop.f32.mrb[77].mxu1  ;;  %v2101_v36 = vrot.slane %v2100_v24, 1 }
 0x415   :  { %v1904_v60 = vadd.f32 %v1903_v59, %v3366_v5  ;;  %v1905_v61 = vpop.f32.mrb[78].mxu1  ;;  %v2110_v38 = vrot.slane %v2109_v12, 1 }
 0x416   :  { %v2042_v63 = vmax.f32 %v1902_v58, 0.0  ;;  %v1906_v1 = vadd.f32 %v1905_v61, %v3363_v3  ;;  %v1907_v2 = vpop.f32.mrb[79].mxu1  ;;  %v2102_v48 = vadd.f32 %v2101_v36, %v2100_v24 }
 0x417   :  { %v2043_v6 = vmax.f32 %v1904_v60, 0.0  ;;  %v1908_v7 = vadd.f32 %v1907_v2, %v3366_v5  ;;  %v2111_v53 = vadd.f32 %v2110_v38, %v2109_v12 }
 0x418   :  { %v2113_v9 = vadd.f32 %v2112_v54, %v2042_v63  ;;  %v2044_v0 = vmax.f32 %v1906_v1, 0.0 }
 0x419   :  { %v2122_v11 = vadd.f32 %v2121_v56, %v2043_v6  ;;  %v2045_v14 = vmax.f32 %v1908_v7, 0.0 }
 0x41a   :  { %v2114_v16 = vadd.f32 %v2113_v9, %v2044_v0 }
 0x41b   :  { %v2123_v17 = vadd.f32 %v2122_v11, %v2045_v14  ;;  %v1911_v18 = vpop.f32.mrb[80].mxu1 }
 0x41c   :  { %v2115_v19 = vrot.slane %v2114_v16, 4  ;;  %v1912_v10 = vadd.f32 %v1911_v18, %v3363_v3  ;;  %v1913_v20 = vpop.f32.mrb[81].mxu1 }
 0x41d   :  { %v2124_v21 = vrot.slane %v2123_v17, 4  ;;  %v1914_v22 = vadd.f32 %v1913_v20, %v3366_v5  ;;  %v1915_v23 = vpop.f32.mrb[82].mxu1 }
 0x41e   :  { %v2116_v25 = vadd.f32 %v2115_v19, %v2114_v16  ;;  %v1916_v26 = vadd.f32 %v1915_v23, %v3363_v3  ;;  %v1917_v27 = vpop.f32.mrb[83].mxu1  ;;  %v2046_v32 = vmax.f32 %v1912_v10, 0.0 }
 0x41f   :  { %v2125_v13 = vadd.f32 %v2124_v21, %v2123_v17  ;;  %v1918_v28 = vadd.f32 %v1917_v27, %v3366_v5  ;;  %v2047_v34 = vmax.f32 %v1914_v22, 0.0 }
 0x420   :  { %v2117_v31 = vrot.slane %v2116_v25, 2  ;;  %v2048_v33 = vmax.f32 %v1916_v26, 0.0 }
 0x421   :  { %v2126_v42 = vrot.slane %v2125_v13, 2  ;;  %v2049_v35 = vmax.f32 %v1918_v28, 0.0 }
 0x422   :  { %v2118_v29 = vadd.f32 %v2117_v31, %v2116_v25  ;;  %v2130_v37 = vadd.f32 %v2048_v33, %v2046_v32 }
 0x423   :  { %v2127_v39 = vadd.f32 %v2126_v42, %v2125_v13  ;;  %v2139_v40 = vadd.f32 %v2049_v35, %v2047_v34  ;;  %v1921_v41 = vpop.f32.mrb[84].mxu1 }
 0x424   :  { %v2119_v43 = vrot.slane %v2118_v29, 1  ;;  %v1922_v30 = vadd.f32 %v1921_v41, %v3363_v3  ;;  %v1923_v44 = vpop.f32.mrb[85].mxu1 }
 0x425   :  { %v2128_v45 = vrot.slane %v2127_v39, 1  ;;  %v1924_v46 = vadd.f32 %v1923_v44, %v3366_v5  ;;  %v1925_v47 = vpop.f32.mrb[86].mxu1 }
 0x426   :  { %v2120_v49 = vadd.f32 %v2119_v43, %v2118_v29  ;;  %v2050_v50 = vmax.f32 %v1922_v30, 0.0  ;;  %v1926_v51 = vadd.f32 %v1925_v47, %v3363_v3  ;;  %v1927_v52 = vpop.f32.mrb[87].mxu1 }
 0x427   :  { %v2129_v54 = vadd.f32 %v2128_v45, %v2127_v39  ;;  %v2051_v55 = vmax.f32 %v1924_v46, 0.0  ;;  %v1928_v56 = vadd.f32 %v1927_v52, %v3366_v5 }
 0x428   :  { %v2294_v57 = vsel %vm2293_vm0, %v2120_v49, %v2102_v48  ;;  %v2131_v58 = vadd.f32 %v2130_v37, %v2050_v50  ;;  %v2052_v59 = vmax.f32 %v1926_v51, 0.0 }
 0x429   :  { %v2307_v60 = vsel %vm2293_vm0, %v2129_v54, %v2111_v53  ;;  %v2140_v61 = vadd.f32 %v2139_v40, %v2051_v55  ;;  %v2053_v62 = vmax.f32 %v1928_v56, 0.0 }
 0x42a   :  { %v2132_v63 = vadd.f32 %v2131_v58, %v2052_v59 }
 0x42b   :  { %v2141_v1 = vadd.f32 %v2140_v61, %v2053_v62  ;;  %v1931_v2 = vpop.f32.mrb[88].mxu1 }
 0x42c   :  { %v2133_v4 = vrot.slane %v2132_v63, 4  ;;  %v1932_v6 = vadd.f32 %v1931_v2, %v3363_v3  ;;  %v1933_v7 = vpop.f32.mrb[89].mxu1 }
 0x42d   :  { %v2142_v9 = vrot.slane %v2141_v1, 4  ;;  %v1934_v0 = vadd.f32 %v1933_v7, %v3366_v5  ;;  %v1935_v11 = vpop.f32.mrb[90].mxu1 }
 0x42e   :  { %v2134_v14 = vadd.f32 %v2133_v4, %v2132_v63  ;;  %v1936_v15 = vadd.f32 %v1935_v11, %v3363_v3  ;;  %v1937_v16 = vpop.f32.mrb[91].mxu1  ;;  %v2054_v19 = vmax.f32 %v1932_v6, 0.0 }
 0x42f   :  { %v2143_v8 = vadd.f32 %v2142_v9, %v2141_v1  ;;  %v1938_v17 = vadd.f32 %v1937_v16, %v3366_v5  ;;  %v2055_v21 = vmax.f32 %v1934_v0, 0.0 }
 0x430   :  { %v2135_v18 = vrot.slane %v2134_v14, 2  ;;  %v2056_v10 = vmax.f32 %v1936_v15, 0.0 }
 0x431   :  { %v2144_v20 = vrot.slane %v2143_v8, 2  ;;  %v2057_v22 = vmax.f32 %v1938_v17, 0.0 }
 0x432   :  { %v2136_v23 = vadd.f32 %v2135_v18, %v2134_v14  ;;  %v2148_v24 = vadd.f32 %v2056_v10, %v2054_v19 }
 0x433   :  { %v2145_v25 = vadd.f32 %v2144_v20, %v2143_v8  ;;  %v2157_v26 = vadd.f32 %v2057_v22, %v2055_v21  ;;  %v1941_v27 = vpop.f32.mrb[92].mxu1 }
 0x434   :  { %v2137_v12 = vrot.slane %v2136_v23, 1  ;;  %v1942_v13 = vadd.f32 %v1941_v27, %v3363_v3  ;;  %v1943_v28 = vpop.f32.mrb[93].mxu1 }
 0x435   :  { %v2146_v31 = vrot.slane %v2145_v25, 1  ;;  %v1944_v32 = vadd.f32 %v1943_v28, %v3366_v5  ;;  %v1945_v33 = vpop.f32.mrb[94].mxu1 }
 0x436   :  { %v2138_v42 = vadd.f32 %v2137_v12, %v2136_v23  ;;  %v2058_v34 = vmax.f32 %v1942_v13, 0.0  ;;  %v1946_v35 = vadd.f32 %v1945_v33, %v3363_v3  ;;  %v1947_v36 = vpop.f32.mrb[95].mxu1 }
 0x437   :  { %v2147_v29 = vadd.f32 %v2146_v31, %v2145_v25  ;;  %v2059_v37 = vmax.f32 %v1944_v32, 0.0  ;;  %v1948_v38 = vadd.f32 %v1947_v36, %v3366_v5 }
 0x438   :  { %v2296_v39 = vsel %vm2295_vm1, %v2138_v42, %v2294_v57  ;;  %v2149_v40 = vadd.f32 %v2148_v24, %v2058_v34  ;;  %v2060_v41 = vmax.f32 %v1946_v35, 0.0 }
 0x439   :  { %v2158_v43 = vadd.f32 %v2157_v26, %v2059_v37  ;;  %v2061_v30 = vmax.f32 %v1948_v38, 0.0  ;;  %v2308_v44 = vsel %vm2295_vm1, %v2147_v29, %v2307_v60 }
 0x43a   :  { %v2150_v45 = vadd.f32 %v2149_v40, %v2060_v41 }
 0x43b   :  { %v2159_v46 = vadd.f32 %v2158_v43, %v2061_v30  ;;  %v1951_v47 = vpop.f32.mrb[96].mxu1 }
 0x43c   :  { %v2151_v48 = vrot.slane %v2150_v45, 4  ;;  %v1952_v49 = vadd.f32 %v1951_v47, %v3363_v3  ;;  %v1953_v50 = vpop.f32.mrb[97].mxu1 }
 0x43d   :  { %v2160_v51 = vrot.slane %v2159_v46, 4  ;;  %v1954_v52 = vadd.f32 %v1953_v50, %v3366_v5  ;;  %v1955_v53 = vpop.f32.mrb[98].mxu1 }
 0x43e   :  { %v2152_v54 = vadd.f32 %v2151_v48, %v2150_v45  ;;  %v1956_v55 = vadd.f32 %v1955_v53, %v3363_v3  ;;  %v1957_v56 = vpop.f32.mrb[99].mxu1  ;;  %v2062_v60 = vmax.f32 %v1952_v49, 0.0 }
 0x43f   :  { %v2161_v57 = vadd.f32 %v2160_v51, %v2159_v46  ;;  %v1958_v58 = vadd.f32 %v1957_v56, %v3366_v5  ;;  %v2063_v63 = vmax.f32 %v1954_v52, 0.0 }
 0x440   :  { %v2153_v59 = vrot.slane %v2152_v54, 2  ;;  %v2064_v61 = vmax.f32 %v1956_v55, 0.0 }
 0x441   :  { %v2162_v62 = vrot.slane %v2161_v57, 2  ;;  %v2065_v1 = vmax.f32 %v1958_v58, 0.0 }
 0x442   :  { %v2154_v2 = vadd.f32 %v2153_v59, %v2152_v54  ;;  %v2166_v4 = vadd.f32 %v2064_v61, %v2062_v60 }
 0x443   :  { %v2163_v6 = vadd.f32 %v2162_v62, %v2161_v57  ;;  %v2175_v7 = vadd.f32 %v2065_v1, %v2063_v63  ;;  %v1961_v9 = vpop.f32.mrb[100].mxu1 }
 0x444   :  { %v2155_v0 = vrot.slane %v2154_v2, 1  ;;  %v1962_v11 = vadd.f32 %v1961_v9, %v3363_v3  ;;  %v1963_v14 = vpop.f32.mrb[101].mxu1 }
 0x445   :  { %v2164_v15 = vrot.slane %v2163_v6, 1  ;;  %v1964_v16 = vadd.f32 %v1963_v14, %v3366_v5  ;;  %v1965_v8 = vpop.f32.mrb[102].mxu1 }
 0x446   :  { %v2156_v17 = vadd.f32 %v2155_v0, %v2154_v2  ;;  %v2066_v18 = vmax.f32 %v1962_v11, 0.0  ;;  %v1966_v19 = vadd.f32 %v1965_v8, %v3363_v3  ;;  %v1967_v10 = vpop.f32.mrb[103].mxu1 }
 0x447   :  { %v2165_v20 = vadd.f32 %v2164_v15, %v2163_v6  ;;  %v2067_v21 = vmax.f32 %v1964_v16, 0.0  ;;  %v1968_v22 = vadd.f32 %v1967_v10, %v3366_v5 }
 0x448   :  { %v2167_v23 = vadd.f32 %v2166_v4, %v2066_v18  ;;  %v2068_v24 = vmax.f32 %v1966_v19, 0.0  ;;  %v2298_v25 = vsel %vm2297_vm2, %v2156_v17, %v2296_v39 }
 0x449   :  { %v2176_v26 = vadd.f32 %v2175_v7, %v2067_v21  ;;  %v2069_v27 = vmax.f32 %v1968_v22, 0.0  ;;  %v2309_v12 = vsel %vm2297_vm2, %v2165_v20, %v2308_v44 }
 0x44a   :  { %v2168_v13 = vadd.f32 %v2167_v23, %v2068_v24 }
 0x44b   :  { %v2177_v28 = vadd.f32 %v2176_v26, %v2069_v27  ;;  %v1971_v31 = vpop.f32.mrb[104].mxu1 }
 0x44c   :  { %v2169_v32 = vrot.slane %v2168_v13, 4  ;;  %v1972_v33 = vadd.f32 %v1971_v31, %v3363_v3  ;;  %v1973_v42 = vpop.f32.mrb[105].mxu1 }
 0x44d   :  { %v2178_v34 = vrot.slane %v2177_v28, 4  ;;  %v1974_v35 = vadd.f32 %v1973_v42, %v3366_v5  ;;  %v1975_v36 = vpop.f32.mrb[106].mxu1 }
 0x44e   :  { %v2170_v29 = vadd.f32 %v2169_v32, %v2168_v13  ;;  %v1976_v37 = vadd.f32 %v1975_v36, %v3363_v3  ;;  %v1977_v38 = vpop.f32.mrb[107].mxu1  ;;  %v2070_v43 = vmax.f32 %v1972_v33, 0.0 }
 0x44f   :  { %v2179_v40 = vadd.f32 %v2178_v34, %v2177_v28  ;;  %v1978_v39 = vadd.f32 %v1977_v38, %v3366_v5  ;;  %v2071_v45 = vmax.f32 %v1974_v35, 0.0 }
 0x450   :  { %v2171_v41 = vrot.slane %v2170_v29, 2  ;;  %v2072_v30 = vmax.f32 %v1976_v37, 0.0 }
 0x451   :  { %v2180_v44 = vrot.slane %v2179_v40, 2  ;;  %v2073_v46 = vmax.f32 %v1978_v39, 0.0 }
 0x452   :  { %v2172_v47 = vadd.f32 %v2171_v41, %v2170_v29  ;;  %v2184_v48 = vadd.f32 %v2072_v30, %v2070_v43 }
 0x453   :  { %v2181_v49 = vadd.f32 %v2180_v44, %v2179_v40  ;;  %v2193_v50 = vadd.f32 %v2073_v46, %v2071_v45  ;;  %v1981_v51 = vpop.f32.mrb[108].mxu1 }
 0x454   :  { %v2173_v52 = vrot.slane %v2172_v47, 1  ;;  %v1982_v53 = vadd.f32 %v1981_v51, %v3363_v3  ;;  %v1983_v54 = vpop.f32.mrb[109].mxu1 }
 0x455   :  { %v2182_v55 = vrot.slane %v2181_v49, 1  ;;  %v1984_v56 = vadd.f32 %v1983_v54, %v3366_v5  ;;  %v1985_v57 = vpop.f32.mrb[110].mxu1 }
 0x456   :  { %v2174_v58 = vadd.f32 %v2173_v52, %v2172_v47  ;;  %v2074_v59 = vmax.f32 %v1982_v53, 0.0  ;;  %v1986_v60 = vadd.f32 %v1985_v57, %v3363_v3  ;;  %v1987_v61 = vpop.f32.mrb[111].mxu1 }
 0x457   :  { %v2183_v62 = vadd.f32 %v2182_v55, %v2181_v49  ;;  %v2075_v63 = vmax.f32 %v1984_v56, 0.0  ;;  %v1988_v1 = vadd.f32 %v1987_v61, %v3366_v5 }
 0x458   :  { %v2185_v2 = vadd.f32 %v2184_v48, %v2074_v59  ;;  %v2076_v4 = vmax.f32 %v1986_v60, 0.0  ;;  %v2300_v6 = vsel %vm2299_vm3, %v2174_v58, %v2298_v25 }
 0x459   :  { %v2194_v7 = vadd.f32 %v2193_v50, %v2075_v63  ;;  %v2077_v9 = vmax.f32 %v1988_v1, 0.0  ;;  %v2310_v0 = vsel %vm2299_vm3, %v2183_v62, %v2309_v12 }
 0x45a   :  { %v2186_v11 = vadd.f32 %v2185_v2, %v2076_v4 }
 0x45b   :  { %v2195_v14 = vadd.f32 %v2194_v7, %v2077_v9  ;;  %v1991_v15 = vpop.f32.mrb[112].mxu1 }
 0x45c   :  { %v2187_v16 = vrot.slane %v2186_v11, 4  ;;  %v1992_v8 = vadd.f32 %v1991_v15, %v3363_v3  ;;  %v1993_v17 = vpop.f32.mrb[113].mxu1 }
 0x45d   :  { %v2196_v18 = vrot.slane %v2195_v14, 4  ;;  %v1994_v19 = vadd.f32 %v1993_v17, %v3366_v5  ;;  %v1995_v10 = vpop.f32.mrb[114].mxu1 }
 0x45e   :  { %v2188_v20 = vadd.f32 %v2187_v16, %v2186_v11  ;;  %v1996_v21 = vadd.f32 %v1995_v10, %v3363_v3  ;;  %v1997_v22 = vpop.f32.mrb[115].mxu1  ;;  %v2078_v26 = vmax.f32 %v1992_v8, 0.0 }
 0x45f   :  { %v2197_v23 = vadd.f32 %v2196_v18, %v2195_v14  ;;  %v1998_v24 = vadd.f32 %v1997_v22, %v3366_v5  ;;  %v2079_v13 = vmax.f32 %v1994_v19, 0.0 }
 0x460   :  { %v2189_v25 = vrot.slane %v2188_v20, 2  ;;  %v2080_v27 = vmax.f32 %v1996_v21, 0.0 }
 0x461   :  { %v2198_v12 = vrot.slane %v2197_v23, 2  ;;  %v2081_v28 = vmax.f32 %v1998_v24, 0.0 }
 0x462   :  { %v2190_v31 = vadd.f32 %v2189_v25, %v2188_v20  ;;  %v2202_v32 = vadd.f32 %v2080_v27, %v2078_v26 }
 0x463   :  { %v2199_v33 = vadd.f32 %v2198_v12, %v2197_v23  ;;  %v2211_v42 = vadd.f32 %v2081_v28, %v2079_v13  ;;  %v2001_v34 = vpop.f32.mrb[116].mxu1 }
 0x464   :  { %v2191_v35 = vrot.slane %v2190_v31, 1  ;;  %v2002_v36 = vadd.f32 %v2001_v34, %v3363_v3  ;;  %v2003_v29 = vpop.f32.mrb[117].mxu1 }
 0x465   :  { %v2200_v37 = vrot.slane %v2199_v33, 1  ;;  %v2004_v38 = vadd.f32 %v2003_v29, %v3366_v5  ;;  %v2005_v40 = vpop.f32.mrb[118].mxu1 }
 0x466   :  { %v2192_v39 = vadd.f32 %v2191_v35, %v2190_v31  ;;  %v2082_v41 = vmax.f32 %v2002_v36, 0.0  ;;  %v2006_v43 = vadd.f32 %v2005_v40, %v3363_v3  ;;  %v2007_v30 = vpop.f32.mrb[119].mxu1 }
 0x467   :  { %v2201_v44 = vadd.f32 %v2200_v37, %v2199_v33  ;;  %v2083_v45 = vmax.f32 %v2004_v38, 0.0  ;;  %v2008_v46 = vadd.f32 %v2007_v30, %v3366_v5 }
 0x468   :  { %v2203_v47 = vadd.f32 %v2202_v32, %v2082_v41  ;;  %v2084_v48 = vmax.f32 %v2006_v43, 0.0  ;;  %v2302_v49 = vsel %vm2301_vm4, %v2192_v39, %v2300_v6 }
 0x469   :  { %v2212_v50 = vadd.f32 %v2211_v42, %v2083_v45  ;;  %v2085_v51 = vmax.f32 %v2008_v46, 0.0  ;;  %v2311_v52 = vsel %vm2301_vm4, %v2201_v44, %v2310_v0 }
 0x46a   :  { %v2204_v53 = vadd.f32 %v2203_v47, %v2084_v48 }
 0x46b   :  { %v2213_v54 = vadd.f32 %v2212_v50, %v2085_v51  ;;  %v2011_v55 = vpop.f32.mrb[120].mxu1  ;;  %v2533_v50 = vld [vmem:[%s3461_s10] ss:$0 sm:$0xff] }
 0x46c   :  { %v2205_v56 = vrot.slane %v2204_v53, 4  ;;  %v2012_v57 = vadd.f32 %v2011_v55, %v3363_v3  ;;  %v2013_v58 = vpop.f32.mrb[121].mxu1 }
 0x46d   :  { %v2214_v59 = vrot.slane %v2213_v54, 4  ;;  %v2014_v60 = vadd.f32 %v2013_v58, %v3366_v5  ;;  %v2015_v61 = vpop.f32.mrb[122].mxu1 }
 0x46e   :  { %v2206_v62 = vadd.f32 %v2205_v56, %v2204_v53  ;;  %v2016_v63 = vadd.f32 %v2015_v61, %v3363_v3  ;;  %v2017_v1 = vpop.f32.mrb[123].mxu1  ;;  %v2086_v7 = vmax.f32 %v2012_v57, 0.0 }
 0x46f   :  { %v2215_v2 = vadd.f32 %v2214_v59, %v2213_v54  ;;  %v2018_v4 = vadd.f32 %v2017_v1, %v3366_v5  ;;  %v2087_v11 = vmax.f32 %v2014_v60, 0.0 }
 0x470   :  { %v2207_v6 = vrot.slane %v2206_v62, 2  ;;  %v2088_v9 = vmax.f32 %v2016_v63, 0.0 }
 0x471   :  { %v2216_v0 = vrot.slane %v2215_v2, 2  ;;  %v2089_v14 = vmax.f32 %v2018_v4, 0.0 }
 0x472   :  { %v2208_v15 = vadd.f32 %v2207_v6, %v2206_v62  ;;  %v2220_v16 = vadd.f32 %v2088_v9, %v2086_v7 }
 0x473   :  { %v2217_v8 = vadd.f32 %v2216_v0, %v2215_v2  ;;  %v2229_v17 = vadd.f32 %v2089_v14, %v2087_v11  ;;  %v2021_v18 = vpop.f32.mrb[124].mxu1 }
 0x474   :  { %v2209_v19 = vrot.slane %v2208_v15, 1  ;;  %v2022_v10 = vadd.f32 %v2021_v18, %v3363_v3  ;;  %v2023_v20 = vpop.f32.mrb[125].mxu1 }
 0x475   :  { %v2218_v21 = vrot.slane %v2217_v8, 1  ;;  %v2024_v22 = vadd.f32 %v2023_v20, %v3366_v5  ;;  %v2025_v23 = vpop.f32.mrb[126].mxu1 }
 0x476   :  { %v2210_v24 = vadd.f32 %v2209_v19, %v2208_v15  ;;  %v2090_v25 = vmax.f32 %v2022_v10, 0.0  ;;  %v2026_v26 = vadd.f32 %v2025_v23, %v3363_v3  ;;  %v2027_v27 = vpop.f32.mrb[127].mxu1 }
 0x477   :  { %v2091_v12 = vmax.f32 %v2024_v22, 0.0  ;;  %v2028_v13 = vadd.f32 %v2027_v27, %v3366_v5  ;;  %v2219_v28 = vadd.f32 %v2218_v21, %v2217_v8 }
 0x478   :  { %v2221_v31 = vadd.f32 %v2220_v16, %v2090_v25  ;;  %v2092_v32 = vmax.f32 %v2026_v26, 0.0  ;;  %v2304_v33 = vsel %vm2303_vm5, %v2210_v24, %v2302_v49 }
 0x479   :  { %v2230_v42 = vadd.f32 %v2229_v17, %v2091_v12  ;;  %v2093_v34 = vmax.f32 %v2028_v13, 0.0  ;;  %v2312_v35 = vsel %vm2303_vm5, %v2219_v28, %v2311_v52 }
 0x47a   :  { %v2222_v36 = vadd.f32 %v2221_v31, %v2092_v32 }
 0x47b   :  { %v2231_v29 = vadd.f32 %v2230_v42, %v2093_v34 }
 0x47c   :  { %v2223_v37 = vrot.slane %v2222_v36, 4 }
 0x47d   :  { %v2232_v38 = vrot.slane %v2231_v29, 4 }
 0x47e   :  { %v2224_v40 = vadd.f32 %v2223_v37, %v2222_v36 }
 0x47f   :  { %v2233_v39 = vadd.f32 %v2232_v38, %v2231_v29 }
 0x480   :  { %v2225_v41 = vrot.slane %v2224_v40, 2 }
 0x481   :  { %v2234_v43 = vrot.slane %v2233_v39, 2 }
 0x482   :  { %v2226_v3 = vadd.f32 %v2225_v41, %v2224_v40 }
 0x483   :  { %v2235_v30 = vadd.f32 %v2234_v43, %v2233_v39 }
 0x484   :  { %v2227_v44 = vrot.slane %v2226_v3, 1 }
 0x485   :  { %v2236_v45 = vrot.slane %v2235_v30, 1 }
 0x486   :  { %v2228_v5 = vadd.f32 %v2227_v44, %v2226_v3 }
 0x487   :  { %v2237_v46 = vadd.f32 %v2236_v45, %v2235_v30 }
 0x488   :  { %v2306_v47 = vsel %vm2305_vm6, %v2228_v5, %v2304_v33 }
 0x489   :  { %v2313_v48 = vsel %vm2305_vm6, %v2237_v46, %v2312_v35 }
 0x48a   :  { %2380 = vmatprep.mubr.f32.mxu0 %v2313_v48 }
 0x48b   :  { %2381 = vmatmul.mubr.f32.vlgmr.msra.gmra.mrb[128].mxu0 %v2306_v47 }
 0x55e   :  { %v2566_v49 = vpop.f32.mrb[128].mxu0 }
 0x55f   :  { %v2567_v51 = vpop.f32.mrb[129].mxu0 }
 0x560   :  { %v2568_v52 = vadd.f32 %v2567_v51, %v2566_v49 }
 0x562   :  { %v2383_v53 = vadd.f32 %v2568_v52, %v2533_v50 }
 0x564   :  { %2386 = vst [vmem:[#allocation13] sm:$0xff] %v2383_v53 }
 0x565   :  { %2940 = shalt.err (!%p2937_p10)
}
 0x566   :  { %s2941_s3 = scalar_lea.hbm %s3462_s11, 128 }
 0x567   :  { %p2942_p11 = scmp.ne.s32.totalorder %s3462_s11, %s2941_s3  ;;  %p2945_p12 = scmp.lt.u32.totalorder %s2941_s3, %s3462_s11 }
 0x569   :  { %p2947_p13 = pnand %p2945_p12, %p2942_p11 }
 0x56b   :  { %2950 = shalt.err (!%p2947_p13)
}
 0x56c   :  { %2396 = dma.vmem_to_hbm [thread:$0]  %s2394_s19, 128, %s3462_s11, [#allocation4]  }
 0x56d   :  { %2959 = dma.done.wait [#allocation4], 128  }
 0x56e   :  { %2960 = vsyncadd [#allocation4], 4294967168 }
 0x56f   :  { %2400 = vsyncpa [#allocation3], 1 }
 0x570   :  { %2401 = vsyncpa [#allocation6], 1 }
 0x571   :  { %2402 = vsyncpa [#allocation9], 1 }
 0x572   :  { %2403 = vsyncpa [#allocation12], 1 }
 0x573   :  { %2404 = vsyncpa [#allocation4], 1 }

</bundles_post_ra>
